<compile_context>
chip_gen: v6e
topology: v6e:2x2x1
jax: 0.10.0
libtpu: 0.0.40
codegen_flags: <defaults>
</compile_context>

<pallas_src>
import functools

import jax
import jax.numpy as jnp
from jax import lax
from jax.experimental import pallas as pl
from jax.experimental.pallas import tpu as pltpu


# ---------------------------------------------------------------------------
# Fused kernel: n_layers x GRU + Linear + LayerNorm, one grid step, all VMEM.
# Gate order follows PyTorch: [r, z, n].
# ---------------------------------------------------------------------------
def _fused_gru_kernel(n_layers, d_in0, x_ref, h0_ref, w_ref, b_ref,
                      head_w_ref, head_c_ref, o_ref, hN_ref, y_scr):
    """Ref layout:
      x_ref     : (T*B, D)         time-major flat input (row = t*B + b)
      h0_ref    : (L, B, H)
      w_ref     : (L, Dmax+H, 3H)  rows [0:Dmax] = W_ih (zero-padded), [Dmax:] = W_hh
      b_ref     : (L, 1, 4H)       [b_ih_r+b_hh_r | b_ih_z+b_hh_z | b_ih_n | b_hh_n]
      head_w_ref: (H, O)
      head_c_ref: (3, O)           rows: out_bias, ln_gamma, ln_beta
      o_ref     : (T*B, O)
      hN_ref    : (L, B, H)
      y_scr     : (T*B, H)         per-layer output slab (flat, lane-dense)
    """
    L = n_layers
    _, B, H = h0_ref.shape
    TB = x_ref.shape[0]
    T = TB // B
    Dmax = w_ref.shape[1] - H

    for l in range(L):
        d_in = d_in0 if l == 0 else H

        # --- per-layer parameter loads, hoisted out of the time loop ---
        w_l = w_ref[l]                                   # (Dmax+H, 3H), single VMEM load
        wih = w_l[0:d_in, :]                             # (d_in, 3H)
        whh = w_l[Dmax:Dmax + H, :]                      # (H, 3H)
        b_l = b_ref[l]                                   # (1, 4H)
        bias_i = b_l[:, 0:3 * H]                         # (1, 3H)
        b_hn = b_l[:, 3 * H:4 * H]                       # (1, H)

        # --- input-gate slab for ALL timesteps: ONE MXU matmul per layer ---
        in_slab = x_ref[...] if l == 0 else y_scr[...]   # (T*B, d_in)
        gi_all = jnp.dot(in_slab, wih,
                         preferred_element_type=jnp.float32) + bias_i   # (T*B, 3H)

        # --- serial time recurrence: only the recurrent dot per step ---
        # TODO(synk): for production T use lax.fori_loop + pltpu.matmul_push_rhs
        # to keep W_hh resident in the MXU across steps.
        h = h0_ref[l]                                    # (B, H), loop-carried in vregs
        for t in range(T):                               # static unroll (T small)
            gh = jnp.dot(h, whh, preferred_element_type=jnp.float32)    # (B, 3H)
            gi = gi_all[t * B:(t + 1) * B, :]                            # (B, 3H)
            rz = jax.nn.sigmoid(gi[:, 0:2 * H] + gh[:, 0:2 * H])         # fused r|z
            r = rz[:, 0:H]
            z = rz[:, H:2 * H]
            n = jnp.tanh(gi[:, 2 * H:3 * H] + r * (gh[:, 2 * H:3 * H] + b_hn))
            h = n + z * (h - n)                          # == (1-z)*n + z*h
            y_scr[pl.ds(t * B, B), :] = h                # contiguous B-row block store
        hN_ref[l] = h.astype(hN_ref.dtype)

    # --- fused head: one slab matmul over (T*B, H) + LayerNorm(eps=1e-5) ---
    hc = head_c_ref[...]                                 # (3, O)
    y = jnp.dot(y_scr[...], head_w_ref[...],
                preferred_element_type=jnp.float32) + hc[0:1, :]
    mean = jnp.mean(y, axis=-1, keepdims=True)
    var = jnp.mean((y - mean) ** 2, axis=-1, keepdims=True)
    y = (y - mean) * lax.rsqrt(var + 1e-5)
    y = y * hc[1:2, :] + hc[2:3, :]
    o_ref[...] = y.astype(o_ref.dtype)


def _full_spec(shape):
    nd = len(shape)
    return pl.BlockSpec(tuple(shape), lambda i, _nd=nd: (0,) * _nd)


# ---------------------------------------------------------------------------
# Full GRUTrajEncoder.forward
# ---------------------------------------------------------------------------
@jax.jit
def gru_traj_encoder_forward(seq_btd, h0_lbh, params):
    """seq_btd: (B, T, tstep_dim), h0_lbh: (n_layers, B, d_hidden).
    Returns (out (B, T, d_output), new_hidden (n_layers, B, d_hidden))."""
    B, T, D = seq_btd.shape
    L = len(params["gru"])
    H = h0_lbh.shape[-1]
    O = params["out_w"].shape[-1]
    Dmax = max(D, H)

    # time-major flattened input: row t*B + b, so each timestep is a contiguous
    # B-row block inside the kernel (plain sublane slice, no strided gathers).
    x_flat = jnp.swapaxes(seq_btd.astype(jnp.float32), 0, 1).reshape(T * B, D)

    # --- pack the 4*L + 4 small parameter tensors into 4 lane-dense slabs ---
    w_rows, b_rows = [], []
    for l, p in enumerate(params["gru"]):
        d_in = D if l == 0 else H
        wih = jnp.concatenate([p["wih"][0], p["wih"][1], p["wih"][2]], axis=-1)  # (d_in, 3H)
        whh = jnp.concatenate([p["whh"][0], p["whh"][1], p["whh"][2]], axis=-1)  # (H, 3H)
        wih_pad = jnp.zeros((Dmax, 3 * H), jnp.float32).at[:d_in, :].set(wih)
        w_rows.append(jnp.concatenate([wih_pad, whh], axis=0))                   # (Dmax+H, 3H)
        # fold input+hidden biases for r and z; keep b_hh_n separate (inside r*(.))
        bias_i = jnp.concatenate([p["bih"][0] + p["bhh"][0],
                                  p["bih"][1] + p["bhh"][1],
                                  p["bih"][2]], axis=-1)                          # (1, 3H)
        b_rows.append(jnp.concatenate([bias_i, p["bhh"][2]], axis=-1))            # (1, 4H)
    w_all = jnp.stack(w_rows, axis=0)                          # (L, Dmax+H, 3H)
    b_all = jnp.stack(b_rows, axis=0)                          # (L, 1, 4H)
    head_w = params["out_w"].astype(jnp.float32)               # (H, O)
    head_c = jnp.concatenate([params["out_b"], params["ln_g"],
                              params["ln_b"]], axis=0).astype(jnp.float32)        # (3, O)

    args = [x_flat, h0_lbh.astype(jnp.float32), w_all, b_all, head_w, head_c]

    # advisory cost estimate for XLA scheduling around the custom call
    flops = 2 * T * B * H * O
    trans = 0
    for l in range(L):
        d_in = D if l == 0 else H
        flops += 2 * T * B * d_in * 3 * H + 2 * T * B * H * 3 * H
        trans += T * B * 3 * H
    bytes_accessed = 4 * (T * B * D + L * B * H + L * (Dmax + H) * 3 * H
                          + L * 4 * H + H * O + 3 * O + T * B * O + L * B * H)

    out_flat, new_h = pl.pallas_call(
        functools.partial(_fused_gru_kernel, L, D),
        out_shape=(jax.ShapeDtypeStruct((T * B, O), jnp.float32),
                   jax.ShapeDtypeStruct((L, B, H), jnp.float32)),
        grid_spec=pltpu.PrefetchScalarGridSpec(
            num_scalar_prefetch=0,
            grid=(1,),
            in_specs=[_full_spec(a.shape) for a in args],
            out_specs=[_full_spec((T * B, O)), _full_spec((L, B, H))],
            scratch_shapes=[pltpu.VMEM((T * B, H), jnp.float32)],
        ),
        compiler_params=pltpu.CompilerParams(
            dimension_semantics=("arbitrary",)),
        cost_estimate=pl.CostEstimate(flops=flops, transcendentals=trans,
                                      bytes_accessed=bytes_accessed),
    )(*args)

    out = jnp.swapaxes(out_flat.reshape(T, B, O), 0, 1)        # back to batch-first
    return out, new_h


# ---------------------------------------------------------------------------
# Pure-JAX reference (same math) for a correctness check.
# ---------------------------------------------------------------------------
def _ref_forward(seq_btd, h0_lbh, params):
    x = jnp.transpose(seq_btd, (1, 0, 2)).astype(jnp.float32)
    new_h = []
    for l, p in enumerate(params["gru"]):
        wih, whh, bih, bhh = p["wih"], p["whh"], p["bih"], p["bhh"]

        def step(h, x_t):
            r = jax.nn.sigmoid(x_t @ wih[0] + bih[0] + h @ whh[0] + bhh[0])
            z = jax.nn.sigmoid(x_t @ wih[1] + bih[1] + h @ whh[1] + bhh[1])
            n = jnp.tanh(x_t @ wih[2] + bih[2] + r * (h @ whh[2] + bhh[2]))
            h_new = (1.0 - z) * n + z * h
            return h_new, h_new

        h_fin, ys = lax.scan(step, h0_lbh[l], x)
        x = ys
        new_h.append(h_fin)
    y = x @ params["out_w"] + params["out_b"]
    mean = jnp.mean(y, axis=-1, keepdims=True)
    var = jnp.mean((y - mean) ** 2, axis=-1, keepdims=True)
    y = (y - mean) * lax.rsqrt(var + 1e-5) * params["ln_g"] + params["ln_b"]
    return jnp.transpose(y, (1, 0, 2)), jnp.stack(new_h, axis=0)


# ---------------------------------------------------------------------------
# Deterministic parameter construction (PyTorch-style uniform init shapes).
# ---------------------------------------------------------------------------
def make_params(key, tstep_dim, d_hidden, d_output, n_layers):
    k = 1.0 / jnp.sqrt(jnp.float32(d_hidden))
    gru_params = []
    for l in range(n_layers):
        d_in = tstep_dim if l == 0 else d_hidden
        key, k1, k2, k3, k4 = jax.random.split(key, 5)
        gru_params.append(dict(
            wih=jax.random.uniform(k1, (3, d_in, d_hidden), jnp.float32, -k, k),
            whh=jax.random.uniform(k2, (3, d_hidden, d_hidden), jnp.float32, -k, k),
            bih=jax.random.uniform(k3, (3, 1, d_hidden), jnp.float32, -k, k),
            bhh=jax.random.uniform(k4, (3, 1, d_hidden), jnp.float32, -k, k),
        ))
    key, k5, k6 = jax.random.split(key, 3)
    kl = 1.0 / jnp.sqrt(jnp.float32(d_hidden))
    params = dict(
        gru=gru_params,
        out_w=jax.random.uniform(k5, (d_hidden, d_output), jnp.float32, -kl, kl),
        out_b=jax.random.uniform(k6, (1, d_output), jnp.float32, -kl, kl),
        ln_g=jnp.ones((1, d_output), jnp.float32),   # LayerNorm default affine
        ln_b=jnp.zeros((1, d_output), jnp.float32),
    )
    return params


if __name__ == "__main__":
    # Small shapes consistent with the module's forward:
    B, T = 2, 8
    tstep_dim, d_hidden, d_output, n_layers = 16, 32, 32, 2

    key = jax.random.PRNGKey(0)
    key, ks = jax.random.split(key)
    seq = jax.random.normal(ks, (B, T, tstep_dim), jnp.float32)
    h0 = jnp.zeros((n_layers, B, d_hidden), jnp.float32)  # hidden_state=None
    params = make_params(key, tstep_dim, d_hidden, d_output, n_layers)

    out, new_h = gru_traj_encoder_forward(seq, h0, params)
    out = jax.block_until_ready(out)
    new_h = jax.block_until_ready(new_h)

    # sanity check against a pure-JAX reference
    ref_out, ref_h = _ref_forward(seq, h0, params)
    assert out.shape == (B, T, d_output) and new_h.shape == (n_layers, B, d_hidden)
    assert jnp.allclose(out, ref_out, atol=2e-4, rtol=2e-4)
    assert jnp.allclose(new_h, ref_h, atol=2e-4, rtol=2e-4)

    print("KERNEL_OK")
</pallas_src>

<mosaic_0001>
module attributes {stable_mosaic.version = 11 : i64} {
  func.func @_fused_gru_kernel(%arg0: i32, %arg1: memref<16x16xf32, #tpu.memory_space<vmem>>, %arg2: memref<2x2x32xf32, #tpu.memory_space<vmem>>, %arg3: memref<2x64x96xf32, #tpu.memory_space<vmem>>, %arg4: memref<2x1x128xf32, #tpu.memory_space<vmem>>, %arg5: memref<32x32xf32, #tpu.memory_space<vmem>>, %arg6: memref<3x32xf32, #tpu.memory_space<vmem>>, %arg7: memref<16x32xf32, #tpu.memory_space<vmem>>, %arg8: memref<2x2x32xf32, #tpu.memory_space<vmem>>, %arg9: memref<16x32xf32, #tpu.memory_space<vmem>>) attributes {dimension_semantics = [#tpu.dimension_semantics<arbitrary>], iteration_bounds = array<i64: 1>, scalar_prefetch = 0 : i64, scratch_operands = 1 : i64, tpu.core_type = #tpu.core_type<tc>, window_params = [{pipeline_mode = #tpu.pipeline_mode<synchronous>, transform_indices = @transform_0, window_bounds = array<i64: 16, 16>}, {pipeline_mode = #tpu.pipeline_mode<synchronous>, transform_indices = @transform_1, window_bounds = array<i64: 2, 2, 32>}, {pipeline_mode = #tpu.pipeline_mode<synchronous>, transform_indices = @transform_2, window_bounds = array<i64: 2, 64, 96>}, {pipeline_mode = #tpu.pipeline_mode<synchronous>, transform_indices = @transform_3, window_bounds = array<i64: 2, 1, 128>}, {pipeline_mode = #tpu.pipeline_mode<synchronous>, transform_indices = @transform_4, window_bounds = array<i64: 32, 32>}, {pipeline_mode = #tpu.pipeline_mode<synchronous>, transform_indices = @transform_5, window_bounds = array<i64: 3, 32>}, {pipeline_mode = #tpu.pipeline_mode<synchronous>, transform_indices = @transform_6, window_bounds = array<i64: 16, 32>}, {pipeline_mode = #tpu.pipeline_mode<synchronous>, transform_indices = @transform_7, window_bounds = array<i64: 2, 2, 32>}]} {
    %c0 = arith.constant 0 : index
    %c0_0 = arith.constant 0 : index
    %c0_1 = arith.constant 0 : index
    %0 = vector.load %arg3[%c0, %c0_0, %c0_1] : memref<2x64x96xf32, #tpu.memory_space<vmem>>, vector<1x64x96xf32>
    %1 = vector.shape_cast %0 : vector<1x64x96xf32> to vector<64x96xf32>
    %2 = vector.extract_strided_slice %1 {offsets = [0, 0], sizes = [16, 96], strides = [1, 1]} : vector<64x96xf32> to vector<16x96xf32>
    %3 = vector.extract_strided_slice %1 {offsets = [32, 0], sizes = [32, 96], strides = [1, 1]} : vector<64x96xf32> to vector<32x96xf32>
    %c0_2 = arith.constant 0 : index
    %c0_3 = arith.constant 0 : index
    %c0_4 = arith.constant 0 : index
    %4 = vector.load %arg4[%c0_2, %c0_3, %c0_4] : memref<2x1x128xf32, #tpu.memory_space<vmem>>, vector<1x1x128xf32>
    %5 = vector.shape_cast %4 : vector<1x1x128xf32> to vector<1x128xf32>
    %6 = vector.extract_strided_slice %5 {offsets = [0, 0], sizes = [1, 96], strides = [1, 1]} : vector<1x128xf32> to vector<1x96xf32>
    %7 = vector.extract_strided_slice %5 {offsets = [0, 96], sizes = [1, 32], strides = [1, 1]} : vector<1x128xf32> to vector<1x32xf32>
    %c0_5 = arith.constant 0 : index
    %c0_6 = arith.constant 0 : index
    %8 = vector.load %arg1[%c0_5, %c0_6] : memref<16x16xf32, #tpu.memory_space<vmem>>, vector<16x16xf32>
    %cst = arith.constant dense<0.000000e+00> : vector<16x96xf32>
    %9 = tpu.matmul %8, %2, %cst {dimension_numbers = #tpu.dot_dimension_numbers<[1], [0], [0], [1], [0, 0, 1, 1], [], []>} : vector<16x16xf32>, vector<16x96xf32>, vector<16x96xf32> -> vector<16x96xf32>
    %10 = vector.broadcast %6 : vector<1x96xf32> to vector<16x96xf32>
    %11 = arith.addf %9, %10 : vector<16x96xf32>
    %c0_7 = arith.constant 0 : index
    %c0_8 = arith.constant 0 : index
    %c0_9 = arith.constant 0 : index
    %12 = vector.load %arg2[%c0_7, %c0_8, %c0_9] : memref<2x2x32xf32, #tpu.memory_space<vmem>>, vector<1x2x32xf32>
    %13 = vector.shape_cast %12 : vector<1x2x32xf32> to vector<2x32xf32>
    %cst_10 = arith.constant dense<0.000000e+00> : vector<2x96xf32>
    %14 = tpu.matmul %13, %3, %cst_10 {dimension_numbers = #tpu.dot_dimension_numbers<[1], [0], [0], [1], [0, 0, 1, 1], [], []>} : vector<2x32xf32>, vector<32x96xf32>, vector<2x96xf32> -> vector<2x96xf32>
    %15 = vector.extract_strided_slice %11 {offsets = [0, 0], sizes = [2, 96], strides = [1, 1]} : vector<16x96xf32> to vector<2x96xf32>
    %16 = vector.extract_strided_slice %15 {offsets = [0, 0], sizes = [2, 64], strides = [1, 1]} : vector<2x96xf32> to vector<2x64xf32>
    %17 = vector.extract_strided_slice %14 {offsets = [0, 0], sizes = [2, 64], strides = [1, 1]} : vector<2x96xf32> to vector<2x64xf32>
    %18 = arith.addf %16, %17 : vector<2x64xf32>
    %19 = arith.negf %18 : vector<2x64xf32>
    %20 = math.exp %19 : vector<2x64xf32>
    %cst_11 = arith.constant 1.000000e+00 : f32
    %21 = vector.broadcast %cst_11 : f32 to vector<2x64xf32>
    %22 = arith.addf %21, %20 : vector<2x64xf32>
    %23 = arith.divf %21, %22 : vector<2x64xf32>
    %24 = vector.extract_strided_slice %23 {offsets = [0, 0], sizes = [2, 32], strides = [1, 1]} : vector<2x64xf32> to vector<2x32xf32>
    %25 = vector.extract_strided_slice %23 {offsets = [0, 32], sizes = [2, 32], strides = [1, 1]} : vector<2x64xf32> to vector<2x32xf32>
    %26 = vector.extract_strided_slice %15 {offsets = [0, 64], sizes = [2, 32], strides = [1, 1]} : vector<2x96xf32> to vector<2x32xf32>
    %27 = vector.extract_strided_slice %14 {offsets = [0, 64], sizes = [2, 32], strides = [1, 1]} : vector<2x96xf32> to vector<2x32xf32>
    %28 = vector.broadcast %7 : vector<1x32xf32> to vector<2x32xf32>
    %29 = arith.addf %27, %28 : vector<2x32xf32>
    %30 = arith.mulf %24, %29 : vector<2x32xf32>
    %31 = arith.addf %26, %30 : vector<2x32xf32>
    %32 = math.tanh %31 : vector<2x32xf32>
    %33 = arith.subf %13, %32 : vector<2x32xf32>
    %34 = arith.mulf %25, %33 : vector<2x32xf32>
    %35 = arith.addf %32, %34 : vector<2x32xf32>
    %c0_12 = arith.constant 0 : index
    %c0_13 = arith.constant 0 : index
    %36 = vector.load %arg9[%c0_12, %c0_13] : memref<16x32xf32, #tpu.memory_space<vmem>>, vector<2x32xf32>
    tpu.vector_store %arg9[%c0_12, %c0_13], %35 {strides = array<i32>} : memref<16x32xf32, #tpu.memory_space<vmem>>, vector<2x32xf32>,
    %cst_14 = arith.constant dense<0.000000e+00> : vector<2x96xf32>
    %37 = tpu.matmul %35, %3, %cst_14 {dimension_numbers = #tpu.dot_dimension_numbers<[1], [0], [0], [1], [0, 0, 1, 1], [], []>} : vector<2x32xf32>, vector<32x96xf32>, vector<2x96xf32> -> vector<2x96xf32>
    %38 = vector.extract_strided_slice %11 {offsets = [2, 0], sizes = [2, 96], strides = [1, 1]} : vector<16x96xf32> to vector<2x96xf32>
    %39 = vector.extract_strided_slice %38 {offsets = [0, 0], sizes = [2, 64], strides = [1, 1]} : vector<2x96xf32> to vector<2x64xf32>
    %40 = vector.extract_strided_slice %37 {offsets = [0, 0], sizes = [2, 64], strides = [1, 1]} : vector<2x96xf32> to vector<2x64xf32>
    %41 = arith.addf %39, %40 : vector<2x64xf32>
    %42 = arith.negf %41 : vector<2x64xf32>
    %43 = math.exp %42 : vector<2x64xf32>
    %cst_15 = arith.constant 1.000000e+00 : f32
    %44 = vector.broadcast %cst_15 : f32 to vector<2x64xf32>
    %45 = arith.addf %44, %43 : vector<2x64xf32>
    %46 = arith.divf %44, %45 : vector<2x64xf32>
    %47 = vector.extract_strided_slice %46 {offsets = [0, 0], sizes = [2, 32], strides = [1, 1]} : vector<2x64xf32> to vector<2x32xf32>
    %48 = vector.extract_strided_slice %46 {offsets = [0, 32], sizes = [2, 32], strides = [1, 1]} : vector<2x64xf32> to vector<2x32xf32>
    %49 = vector.extract_strided_slice %38 {offsets = [0, 64], sizes = [2, 32], strides = [1, 1]} : vector<2x96xf32> to vector<2x32xf32>
    %50 = vector.extract_strided_slice %37 {offsets = [0, 64], sizes = [2, 32], strides = [1, 1]} : vector<2x96xf32> to vector<2x32xf32>
    %51 = vector.broadcast %7 : vector<1x32xf32> to vector<2x32xf32>
    %52 = arith.addf %50, %51 : vector<2x32xf32>
    %53 = arith.mulf %47, %52 : vector<2x32xf32>
    %54 = arith.addf %49, %53 : vector<2x32xf32>
    %55 = math.tanh %54 : vector<2x32xf32>
    %56 = arith.subf %35, %55 : vector<2x32xf32>
    %57 = arith.mulf %48, %56 : vector<2x32xf32>
    %58 = arith.addf %55, %57 : vector<2x32xf32>
    %c2 = arith.constant 2 : index
    %c0_16 = arith.constant 0 : index
    %59 = vector.load %arg9[%c2, %c0_16] : memref<16x32xf32, #tpu.memory_space<vmem>>, vector<2x32xf32>
    tpu.vector_store %arg9[%c2, %c0_16], %58 {strides = array<i32>} : memref<16x32xf32, #tpu.memory_space<vmem>>, vector<2x32xf32>,
    %cst_17 = arith.constant dense<0.000000e+00> : vector<2x96xf32>
    %60 = tpu.matmul %58, %3, %cst_17 {dimension_numbers = #tpu.dot_dimension_numbers<[1], [0], [0], [1], [0, 0, 1, 1], [], []>} : vector<2x32xf32>, vector<32x96xf32>, vector<2x96xf32> -> vector<2x96xf32>
    %61 = vector.extract_strided_slice %11 {offsets = [4, 0], sizes = [2, 96], strides = [1, 1]} : vector<16x96xf32> to vector<2x96xf32>
    %62 = vector.extract_strided_slice %61 {offsets = [0, 0], sizes = [2, 64], strides = [1, 1]} : vector<2x96xf32> to vector<2x64xf32>
    %63 = vector.extract_strided_slice %60 {offsets = [0, 0], sizes = [2, 64], strides = [1, 1]} : vector<2x96xf32> to vector<2x64xf32>
    %64 = arith.addf %62, %63 : vector<2x64xf32>
    %65 = arith.negf %64 : vector<2x64xf32>
    %66 = math.exp %65 : vector<2x64xf32>
    %cst_18 = arith.constant 1.000000e+00 : f32
    %67 = vector.broadcast %cst_18 : f32 to vector<2x64xf32>
    %68 = arith.addf %67, %66 : vector<2x64xf32>
    %69 = arith.divf %67, %68 : vector<2x64xf32>
    %70 = vector.extract_strided_slice %69 {offsets = [0, 0], sizes = [2, 32], strides = [1, 1]} : vector<2x64xf32> to vector<2x32xf32>
    %71 = vector.extract_strided_slice %69 {offsets = [0, 32], sizes = [2, 32], strides = [1, 1]} : vector<2x64xf32> to vector<2x32xf32>
    %72 = vector.extract_strided_slice %61 {offsets = [0, 64], sizes = [2, 32], strides = [1, 1]} : vector<2x96xf32> to vector<2x32xf32>
    %73 = vector.extract_strided_slice %60 {offsets = [0, 64], sizes = [2, 32], strides = [1, 1]} : vector<2x96xf32> to vector<2x32xf32>
    %74 = vector.broadcast %7 : vector<1x32xf32> to vector<2x32xf32>
    %75 = arith.addf %73, %74 : vector<2x32xf32>
    %76 = arith.mulf %70, %75 : vector<2x32xf32>
    %77 = arith.addf %72, %76 : vector<2x32xf32>
    %78 = math.tanh %77 : vector<2x32xf32>
    %79 = arith.subf %58, %78 : vector<2x32xf32>
    %80 = arith.mulf %71, %79 : vector<2x32xf32>
    %81 = arith.addf %78, %80 : vector<2x32xf32>
    %c4 = arith.constant 4 : index
    %c0_19 = arith.constant 0 : index
    %82 = vector.load %arg9[%c4, %c0_19] : memref<16x32xf32, #tpu.memory_space<vmem>>, vector<2x32xf32>
    tpu.vector_store %arg9[%c4, %c0_19], %81 {strides = array<i32>} : memref<16x32xf32, #tpu.memory_space<vmem>>, vector<2x32xf32>,
    %cst_20 = arith.constant dense<0.000000e+00> : vector<2x96xf32>
    %83 = tpu.matmul %81, %3, %cst_20 {dimension_numbers = #tpu.dot_dimension_numbers<[1], [0], [0], [1], [0, 0, 1, 1], [], []>} : vector<2x32xf32>, vector<32x96xf32>, vector<2x96xf32> -> vector<2x96xf32>
    %84 = vector.extract_strided_slice %11 {offsets = [6, 0], sizes = [2, 96], strides = [1, 1]} : vector<16x96xf32> to vector<2x96xf32>
    %85 = vector.extract_strided_slice %84 {offsets = [0, 0], sizes = [2, 64], strides = [1, 1]} : vector<2x96xf32> to vector<2x64xf32>
    %86 = vector.extract_strided_slice %83 {offsets = [0, 0], sizes = [2, 64], strides = [1, 1]} : vector<2x96xf32> to vector<2x64xf32>
    %87 = arith.addf %85, %86 : vector<2x64xf32>
    %88 = arith.negf %87 : vector<2x64xf32>
    %89 = math.exp %88 : vector<2x64xf32>
    %cst_21 = arith.constant 1.000000e+00 : f32
    %90 = vector.broadcast %cst_21 : f32 to vector<2x64xf32>
    %91 = arith.addf %90, %89 : vector<2x64xf32>
    %92 = arith.divf %90, %91 : vector<2x64xf32>
    %93 = vector.extract_strided_slice %92 {offsets = [0, 0], sizes = [2, 32], strides = [1, 1]} : vector<2x64xf32> to vector<2x32xf32>
    %94 = vector.extract_strided_slice %92 {offsets = [0, 32], sizes = [2, 32], strides = [1, 1]} : vector<2x64xf32> to vector<2x32xf32>
    %95 = vector.extract_strided_slice %84 {offsets = [0, 64], sizes = [2, 32], strides = [1, 1]} : vector<2x96xf32> to vector<2x32xf32>
    %96 = vector.extract_strided_slice %83 {offsets = [0, 64], sizes = [2, 32], strides = [1, 1]} : vector<2x96xf32> to vector<2x32xf32>
    %97 = vector.broadcast %7 : vector<1x32xf32> to vector<2x32xf32>
    %98 = arith.addf %96, %97 : vector<2x32xf32>
    %99 = arith.mulf %93, %98 : vector<2x32xf32>
    %100 = arith.addf %95, %99 : vector<2x32xf32>
    %101 = math.tanh %100 : vector<2x32xf32>
    %102 = arith.subf %81, %101 : vector<2x32xf32>
    %103 = arith.mulf %94, %102 : vector<2x32xf32>
    %104 = arith.addf %101, %103 : vector<2x32xf32>
    %c6 = arith.constant 6 : index
    %c0_22 = arith.constant 0 : index
    %105 = vector.load %arg9[%c6, %c0_22] : memref<16x32xf32, #tpu.memory_space<vmem>>, vector<2x32xf32>
    tpu.vector_store %arg9[%c6, %c0_22], %104 {strides = array<i32>} : memref<16x32xf32, #tpu.memory_space<vmem>>, vector<2x32xf32>,
    %cst_23 = arith.constant dense<0.000000e+00> : vector<2x96xf32>
    %106 = tpu.matmul %104, %3, %cst_23 {dimension_numbers = #tpu.dot_dimension_numbers<[1], [0], [0], [1], [0, 0, 1, 1], [], []>} : vector<2x32xf32>, vector<32x96xf32>, vector<2x96xf32> -> vector<2x96xf32>
    %107 = vector.extract_strided_slice %11 {offsets = [8, 0], sizes = [2, 96], strides = [1, 1]} : vector<16x96xf32> to vector<2x96xf32>
    %108 = vector.extract_strided_slice %107 {offsets = [0, 0], sizes = [2, 64], strides = [1, 1]} : vector<2x96xf32> to vector<2x64xf32>
    %109 = vector.extract_strided_slice %106 {offsets = [0, 0], sizes = [2, 64], strides = [1, 1]} : vector<2x96xf32> to vector<2x64xf32>
    %110 = arith.addf %108, %109 : vector<2x64xf32>
    %111 = arith.negf %110 : vector<2x64xf32>
    %112 = math.exp %111 : vector<2x64xf32>
    %cst_24 = arith.constant 1.000000e+00 : f32
    %113 = vector.broadcast %cst_24 : f32 to vector<2x64xf32>
    %114 = arith.addf %113, %112 : vector<2x64xf32>
    %115 = arith.divf %113, %114 : vector<2x64xf32>
    %116 = vector.extract_strided_slice %115 {offsets = [0, 0], sizes = [2, 32], strides = [1, 1]} : vector<2x64xf32> to vector<2x32xf32>
    %117 = vector.extract_strided_slice %115 {offsets = [0, 32], sizes = [2, 32], strides = [1, 1]} : vector<2x64xf32> to vector<2x32xf32>
    %118 = vector.extract_strided_slice %107 {offsets = [0, 64], sizes = [2, 32], strides = [1, 1]} : vector<2x96xf32> to vector<2x32xf32>
    %119 = vector.extract_strided_slice %106 {offsets = [0, 64], sizes = [2, 32], strides = [1, 1]} : vector<2x96xf32> to vector<2x32xf32>
    %120 = vector.broadcast %7 : vector<1x32xf32> to vector<2x32xf32>
    %121 = arith.addf %119, %120 : vector<2x32xf32>
    %122 = arith.mulf %116, %121 : vector<2x32xf32>
    %123 = arith.addf %118, %122 : vector<2x32xf32>
    %124 = math.tanh %123 : vector<2x32xf32>
    %125 = arith.subf %104, %124 : vector<2x32xf32>
    %126 = arith.mulf %117, %125 : vector<2x32xf32>
    %127 = arith.addf %124, %126 : vector<2x32xf32>
    %c8 = arith.constant 8 : index
    %c0_25 = arith.constant 0 : index
    %128 = vector.load %arg9[%c8, %c0_25] : memref<16x32xf32, #tpu.memory_space<vmem>>, vector<2x32xf32>
    tpu.vector_store %arg9[%c8, %c0_25], %127 {strides = array<i32>} : memref<16x32xf32, #tpu.memory_space<vmem>>, vector<2x32xf32>,
    %cst_26 = arith.constant dense<0.000000e+00> : vector<2x96xf32>
    %129 = tpu.matmul %127, %3, %cst_26 {dimension_numbers = #tpu.dot_dimension_numbers<[1], [0], [0], [1], [0, 0, 1, 1], [], []>} : vector<2x32xf32>, vector<32x96xf32>, vector<2x96xf32> -> vector<2x96xf32>
    %130 = vector.extract_strided_slice %11 {offsets = [10, 0], sizes = [2, 96], strides = [1, 1]} : vector<16x96xf32> to vector<2x96xf32>
    %131 = vector.extract_strided_slice %130 {offsets = [0, 0], sizes = [2, 64], strides = [1, 1]} : vector<2x96xf32> to vector<2x64xf32>
    %132 = vector.extract_strided_slice %129 {offsets = [0, 0], sizes = [2, 64], strides = [1, 1]} : vector<2x96xf32> to vector<2x64xf32>
    %133 = arith.addf %131, %132 : vector<2x64xf32>
    %134 = arith.negf %133 : vector<2x64xf32>
    %135 = math.exp %134 : vector<2x64xf32>
    %cst_27 = arith.constant 1.000000e+00 : f32
    %136 = vector.broadcast %cst_27 : f32 to vector<2x64xf32>
    %137 = arith.addf %136, %135 : vector<2x64xf32>
    %138 = arith.divf %136, %137 : vector<2x64xf32>
    %139 = vector.extract_strided_slice %138 {offsets = [0, 0], sizes = [2, 32], strides = [1, 1]} : vector<2x64xf32> to vector<2x32xf32>
    %140 = vector.extract_strided_slice %138 {offsets = [0, 32], sizes = [2, 32], strides = [1, 1]} : vector<2x64xf32> to vector<2x32xf32>
    %141 = vector.extract_strided_slice %130 {offsets = [0, 64], sizes = [2, 32], strides = [1, 1]} : vector<2x96xf32> to vector<2x32xf32>
    %142 = vector.extract_strided_slice %129 {offsets = [0, 64], sizes = [2, 32], strides = [1, 1]} : vector<2x96xf32> to vector<2x32xf32>
    %143 = vector.broadcast %7 : vector<1x32xf32> to vector<2x32xf32>
    %144 = arith.addf %142, %143 : vector<2x32xf32>
    %145 = arith.mulf %139, %144 : vector<2x32xf32>
    %146 = arith.addf %141, %145 : vector<2x32xf32>
    %147 = math.tanh %146 : vector<2x32xf32>
    %148 = arith.subf %127, %147 : vector<2x32xf32>
    %149 = arith.mulf %140, %148 : vector<2x32xf32>
    %150 = arith.addf %147, %149 : vector<2x32xf32>
    %c10 = arith.constant 10 : index
    %c0_28 = arith.constant 0 : index
    %151 = vector.load %arg9[%c10, %c0_28] : memref<16x32xf32, #tpu.memory_space<vmem>>, vector<2x32xf32>
    tpu.vector_store %arg9[%c10, %c0_28], %150 {strides = array<i32>} : memref<16x32xf32, #tpu.memory_space<vmem>>, vector<2x32xf32>,
    %cst_29 = arith.constant dense<0.000000e+00> : vector<2x96xf32>
    %152 = tpu.matmul %150, %3, %cst_29 {dimension_numbers = #tpu.dot_dimension_numbers<[1], [0], [0], [1], [0, 0, 1, 1], [], []>} : vector<2x32xf32>, vector<32x96xf32>, vector<2x96xf32> -> vector<2x96xf32>
    %153 = vector.extract_strided_slice %11 {offsets = [12, 0], sizes = [2, 96], strides = [1, 1]} : vector<16x96xf32> to vector<2x96xf32>
    %154 = vector.extract_strided_slice %153 {offsets = [0, 0], sizes = [2, 64], strides = [1, 1]} : vector<2x96xf32> to vector<2x64xf32>
    %155 = vector.extract_strided_slice %152 {offsets = [0, 0], sizes = [2, 64], strides = [1, 1]} : vector<2x96xf32> to vector<2x64xf32>
    %156 = arith.addf %154, %155 : vector<2x64xf32>
    %157 = arith.negf %156 : vector<2x64xf32>
    %158 = math.exp %157 : vector<2x64xf32>
    %cst_30 = arith.constant 1.000000e+00 : f32
    %159 = vector.broadcast %cst_30 : f32 to vector<2x64xf32>
    %160 = arith.addf %159, %158 : vector<2x64xf32>
    %161 = arith.divf %159, %160 : vector<2x64xf32>
    %162 = vector.extract_strided_slice %161 {offsets = [0, 0], sizes = [2, 32], strides = [1, 1]} : vector<2x64xf32> to vector<2x32xf32>
    %163 = vector.extract_strided_slice %161 {offsets = [0, 32], sizes = [2, 32], strides = [1, 1]} : vector<2x64xf32> to vector<2x32xf32>
    %164 = vector.extract_strided_slice %153 {offsets = [0, 64], sizes = [2, 32], strides = [1, 1]} : vector<2x96xf32> to vector<2x32xf32>
    %165 = vector.extract_strided_slice %152 {offsets = [0, 64], sizes = [2, 32], strides = [1, 1]} : vector<2x96xf32> to vector<2x32xf32>
    %166 = vector.broadcast %7 : vector<1x32xf32> to vector<2x32xf32>
    %167 = arith.addf %165, %166 : vector<2x32xf32>
    %168 = arith.mulf %162, %167 : vector<2x32xf32>
    %169 = arith.addf %164, %168 : vector<2x32xf32>
    %170 = math.tanh %169 : vector<2x32xf32>
    %171 = arith.subf %150, %170 : vector<2x32xf32>
    %172 = arith.mulf %163, %171 : vector<2x32xf32>
    %173 = arith.addf %170, %172 : vector<2x32xf32>
    %c12 = arith.constant 12 : index
    %c0_31 = arith.constant 0 : index
    %174 = vector.load %arg9[%c12, %c0_31] : memref<16x32xf32, #tpu.memory_space<vmem>>, vector<2x32xf32>
    tpu.vector_store %arg9[%c12, %c0_31], %173 {strides = array<i32>} : memref<16x32xf32, #tpu.memory_space<vmem>>, vector<2x32xf32>,
    %cst_32 = arith.constant dense<0.000000e+00> : vector<2x96xf32>
    %175 = tpu.matmul %173, %3, %cst_32 {dimension_numbers = #tpu.dot_dimension_numbers<[1], [0], [0], [1], [0, 0, 1, 1], [], []>} : vector<2x32xf32>, vector<32x96xf32>, vector<2x96xf32> -> vector<2x96xf32>
    %176 = vector.extract_strided_slice %11 {offsets = [14, 0], sizes = [2, 96], strides = [1, 1]} : vector<16x96xf32> to vector<2x96xf32>
    %177 = vector.extract_strided_slice %176 {offsets = [0, 0], sizes = [2, 64], strides = [1, 1]} : vector<2x96xf32> to vector<2x64xf32>
    %178 = vector.extract_strided_slice %175 {offsets = [0, 0], sizes = [2, 64], strides = [1, 1]} : vector<2x96xf32> to vector<2x64xf32>
    %179 = arith.addf %177, %178 : vector<2x64xf32>
    %180 = arith.negf %179 : vector<2x64xf32>
    %181 = math.exp %180 : vector<2x64xf32>
    %cst_33 = arith.constant 1.000000e+00 : f32
    %182 = vector.broadcast %cst_33 : f32 to vector<2x64xf32>
    %183 = arith.addf %182, %181 : vector<2x64xf32>
    %184 = arith.divf %182, %183 : vector<2x64xf32>
    %185 = vector.extract_strided_slice %184 {offsets = [0, 0], sizes = [2, 32], strides = [1, 1]} : vector<2x64xf32> to vector<2x32xf32>
    %186 = vector.extract_strided_slice %184 {offsets = [0, 32], sizes = [2, 32], strides = [1, 1]} : vector<2x64xf32> to vector<2x32xf32>
    %187 = vector.extract_strided_slice %176 {offsets = [0, 64], sizes = [2, 32], strides = [1, 1]} : vector<2x96xf32> to vector<2x32xf32>
    %188 = vector.extract_strided_slice %175 {offsets = [0, 64], sizes = [2, 32], strides = [1, 1]} : vector<2x96xf32> to vector<2x32xf32>
    %189 = vector.broadcast %7 : vector<1x32xf32> to vector<2x32xf32>
    %190 = arith.addf %188, %189 : vector<2x32xf32>
    %191 = arith.mulf %185, %190 : vector<2x32xf32>
    %192 = arith.addf %187, %191 : vector<2x32xf32>
    %193 = math.tanh %192 : vector<2x32xf32>
    %194 = arith.subf %173, %193 : vector<2x32xf32>
    %195 = arith.mulf %186, %194 : vector<2x32xf32>
    %196 = arith.addf %193, %195 : vector<2x32xf32>
    %c14 = arith.constant 14 : index
    %c0_34 = arith.constant 0 : index
    %197 = vector.load %arg9[%c14, %c0_34] : memref<16x32xf32, #tpu.memory_space<vmem>>, vector<2x32xf32>
    tpu.vector_store %arg9[%c14, %c0_34], %196 {strides = array<i32>} : memref<16x32xf32, #tpu.memory_space<vmem>>, vector<2x32xf32>,
    %c0_35 = arith.constant 0 : index
    %c0_36 = arith.constant 0 : index
    %c0_37 = arith.constant 0 : index
    %198 = vector.load %arg8[%c0_35, %c0_36, %c0_37] : memref<2x2x32xf32, #tpu.memory_space<vmem>>, vector<1x2x32xf32>
    %199 = vector.shape_cast %198 : vector<1x2x32xf32> to vector<2x32xf32>
    %200 = vector.shape_cast %196 : vector<2x32xf32> to vector<1x2x32xf32>
    tpu.vector_store %arg8[%c0_35, %c0_36, %c0_37], %200 {strides = array<i32>} : memref<2x2x32xf32, #tpu.memory_space<vmem>>, vector<1x2x32xf32>,
    %c1 = arith.constant 1 : index
    %c0_38 = arith.constant 0 : index
    %c0_39 = arith.constant 0 : index
    %201 = vector.load %arg3[%c1, %c0_38, %c0_39] : memref<2x64x96xf32, #tpu.memory_space<vmem>>, vector<1x64x96xf32>
    %202 = vector.shape_cast %201 : vector<1x64x96xf32> to vector<64x96xf32>
    %203 = vector.extract_strided_slice %202 {offsets = [0, 0], sizes = [32, 96], strides = [1, 1]} : vector<64x96xf32> to vector<32x96xf32>
    %204 = vector.extract_strided_slice %202 {offsets = [32, 0], sizes = [32, 96], strides = [1, 1]} : vector<64x96xf32> to vector<32x96xf32>
    %c1_40 = arith.constant 1 : index
    %c0_41 = arith.constant 0 : index
    %c0_42 = arith.constant 0 : index
    %205 = vector.load %arg4[%c1_40, %c0_41, %c0_42] : memref<2x1x128xf32, #tpu.memory_space<vmem>>, vector<1x1x128xf32>
    %206 = vector.shape_cast %205 : vector<1x1x128xf32> to vector<1x128xf32>
    %207 = vector.extract_strided_slice %206 {offsets = [0, 0], sizes = [1, 96], strides = [1, 1]} : vector<1x128xf32> to vector<1x96xf32>
    %208 = vector.extract_strided_slice %206 {offsets = [0, 96], sizes = [1, 32], strides = [1, 1]} : vector<1x128xf32> to vector<1x32xf32>
    %c0_43 = arith.constant 0 : index
    %c0_44 = arith.constant 0 : index
    %209 = vector.load %arg9[%c0_43, %c0_44] : memref<16x32xf32, #tpu.memory_space<vmem>>, vector<16x32xf32>
    %cst_45 = arith.constant dense<0.000000e+00> : vector<16x96xf32>
    %210 = tpu.matmul %209, %203, %cst_45 {dimension_numbers = #tpu.dot_dimension_numbers<[1], [0], [0], [1], [0, 0, 1, 1], [], []>} : vector<16x32xf32>, vector<32x96xf32>, vector<16x96xf32> -> vector<16x96xf32>
    %211 = vector.broadcast %207 : vector<1x96xf32> to vector<16x96xf32>
    %212 = arith.addf %210, %211 : vector<16x96xf32>
    %c1_46 = arith.constant 1 : index
    %c0_47 = arith.constant 0 : index
    %c0_48 = arith.constant 0 : index
    %213 = vector.load %arg2[%c1_46, %c0_47, %c0_48] : memref<2x2x32xf32, #tpu.memory_space<vmem>>, vector<1x2x32xf32>
    %214 = vector.shape_cast %213 : vector<1x2x32xf32> to vector<2x32xf32>
    %cst_49 = arith.constant dense<0.000000e+00> : vector<2x96xf32>
    %215 = tpu.matmul %214, %204, %cst_49 {dimension_numbers = #tpu.dot_dimension_numbers<[1], [0], [0], [1], [0, 0, 1, 1], [], []>} : vector<2x32xf32>, vector<32x96xf32>, vector<2x96xf32> -> vector<2x96xf32>
    %216 = vector.extract_strided_slice %212 {offsets = [0, 0], sizes = [2, 96], strides = [1, 1]} : vector<16x96xf32> to vector<2x96xf32>
    %217 = vector.extract_strided_slice %216 {offsets = [0, 0], sizes = [2, 64], strides = [1, 1]} : vector<2x96xf32> to vector<2x64xf32>
    %218 = vector.extract_strided_slice %215 {offsets = [0, 0], sizes = [2, 64], strides = [1, 1]} : vector<2x96xf32> to vector<2x64xf32>
    %219 = arith.addf %217, %218 : vector<2x64xf32>
    %220 = arith.negf %219 : vector<2x64xf32>
    %221 = math.exp %220 : vector<2x64xf32>
    %cst_50 = arith.constant 1.000000e+00 : f32
    %222 = vector.broadcast %cst_50 : f32 to vector<2x64xf32>
    %223 = arith.addf %222, %221 : vector<2x64xf32>
    %224 = arith.divf %222, %223 : vector<2x64xf32>
    %225 = vector.extract_strided_slice %224 {offsets = [0, 0], sizes = [2, 32], strides = [1, 1]} : vector<2x64xf32> to vector<2x32xf32>
    %226 = vector.extract_strided_slice %224 {offsets = [0, 32], sizes = [2, 32], strides = [1, 1]} : vector<2x64xf32> to vector<2x32xf32>
    %227 = vector.extract_strided_slice %216 {offsets = [0, 64], sizes = [2, 32], strides = [1, 1]} : vector<2x96xf32> to vector<2x32xf32>
    %228 = vector.extract_strided_slice %215 {offsets = [0, 64], sizes = [2, 32], strides = [1, 1]} : vector<2x96xf32> to vector<2x32xf32>
    %229 = vector.broadcast %208 : vector<1x32xf32> to vector<2x32xf32>
    %230 = arith.addf %228, %229 : vector<2x32xf32>
    %231 = arith.mulf %225, %230 : vector<2x32xf32>
    %232 = arith.addf %227, %231 : vector<2x32xf32>
    %233 = math.tanh %232 : vector<2x32xf32>
    %234 = arith.subf %214, %233 : vector<2x32xf32>
    %235 = arith.mulf %226, %234 : vector<2x32xf32>
    %236 = arith.addf %233, %235 : vector<2x32xf32>
    %c0_51 = arith.constant 0 : index
    %c0_52 = arith.constant 0 : index
    %237 = vector.load %arg9[%c0_51, %c0_52] : memref<16x32xf32, #tpu.memory_space<vmem>>, vector<2x32xf32>
    tpu.vector_store %arg9[%c0_51, %c0_52], %236 {strides = array<i32>} : memref<16x32xf32, #tpu.memory_space<vmem>>, vector<2x32xf32>,
    %cst_53 = arith.constant dense<0.000000e+00> : vector<2x96xf32>
    %238 = tpu.matmul %236, %204, %cst_53 {dimension_numbers = #tpu.dot_dimension_numbers<[1], [0], [0], [1], [0, 0, 1, 1], [], []>} : vector<2x32xf32>, vector<32x96xf32>, vector<2x96xf32> -> vector<2x96xf32>
    %239 = vector.extract_strided_slice %212 {offsets = [2, 0], sizes = [2, 96], strides = [1, 1]} : vector<16x96xf32> to vector<2x96xf32>
    %240 = vector.extract_strided_slice %239 {offsets = [0, 0], sizes = [2, 64], strides = [1, 1]} : vector<2x96xf32> to vector<2x64xf32>
    %241 = vector.extract_strided_slice %238 {offsets = [0, 0], sizes = [2, 64], strides = [1, 1]} : vector<2x96xf32> to vector<2x64xf32>
    %242 = arith.addf %240, %241 : vector<2x64xf32>
    %243 = arith.negf %242 : vector<2x64xf32>
    %244 = math.exp %243 : vector<2x64xf32>
    %cst_54 = arith.constant 1.000000e+00 : f32
    %245 = vector.broadcast %cst_54 : f32 to vector<2x64xf32>
    %246 = arith.addf %245, %244 : vector<2x64xf32>
    %247 = arith.divf %245, %246 : vector<2x64xf32>
    %248 = vector.extract_strided_slice %247 {offsets = [0, 0], sizes = [2, 32], strides = [1, 1]} : vector<2x64xf32> to vector<2x32xf32>
    %249 = vector.extract_strided_slice %247 {offsets = [0, 32], sizes = [2, 32], strides = [1, 1]} : vector<2x64xf32> to vector<2x32xf32>
    %250 = vector.extract_strided_slice %239 {offsets = [0, 64], sizes = [2, 32], strides = [1, 1]} : vector<2x96xf32> to vector<2x32xf32>
    %251 = vector.extract_strided_slice %238 {offsets = [0, 64], sizes = [2, 32], strides = [1, 1]} : vector<2x96xf32> to vector<2x32xf32>
    %252 = vector.broadcast %208 : vector<1x32xf32> to vector<2x32xf32>
    %253 = arith.addf %251, %252 : vector<2x32xf32>
    %254 = arith.mulf %248, %253 : vector<2x32xf32>
    %255 = arith.addf %250, %254 : vector<2x32xf32>
    %256 = math.tanh %255 : vector<2x32xf32>
    %257 = arith.subf %236, %256 : vector<2x32xf32>
    %258 = arith.mulf %249, %257 : vector<2x32xf32>
    %259 = arith.addf %256, %258 : vector<2x32xf32>
    %c2_55 = arith.constant 2 : index
    %c0_56 = arith.constant 0 : index
    %260 = vector.load %arg9[%c2_55, %c0_56] : memref<16x32xf32, #tpu.memory_space<vmem>>, vector<2x32xf32>
    tpu.vector_store %arg9[%c2_55, %c0_56], %259 {strides = array<i32>} : memref<16x32xf32, #tpu.memory_space<vmem>>, vector<2x32xf32>,
    %cst_57 = arith.constant dense<0.000000e+00> : vector<2x96xf32>
    %261 = tpu.matmul %259, %204, %cst_57 {dimension_numbers = #tpu.dot_dimension_numbers<[1], [0], [0], [1], [0, 0, 1, 1], [], []>} : vector<2x32xf32>, vector<32x96xf32>, vector<2x96xf32> -> vector<2x96xf32>
    %262 = vector.extract_strided_slice %212 {offsets = [4, 0], sizes = [2, 96], strides = [1, 1]} : vector<16x96xf32> to vector<2x96xf32>
    %263 = vector.extract_strided_slice %262 {offsets = [0, 0], sizes = [2, 64], strides = [1, 1]} : vector<2x96xf32> to vector<2x64xf32>
    %264 = vector.extract_strided_slice %261 {offsets = [0, 0], sizes = [2, 64], strides = [1, 1]} : vector<2x96xf32> to vector<2x64xf32>
    %265 = arith.addf %263, %264 : vector<2x64xf32>
    %266 = arith.negf %265 : vector<2x64xf32>
    %267 = math.exp %266 : vector<2x64xf32>
    %cst_58 = arith.constant 1.000000e+00 : f32
    %268 = vector.broadcast %cst_58 : f32 to vector<2x64xf32>
    %269 = arith.addf %268, %267 : vector<2x64xf32>
    %270 = arith.divf %268, %269 : vector<2x64xf32>
    %271 = vector.extract_strided_slice %270 {offsets = [0, 0], sizes = [2, 32], strides = [1, 1]} : vector<2x64xf32> to vector<2x32xf32>
    %272 = vector.extract_strided_slice %270 {offsets = [0, 32], sizes = [2, 32], strides = [1, 1]} : vector<2x64xf32> to vector<2x32xf32>
    %273 = vector.extract_strided_slice %262 {offsets = [0, 64], sizes = [2, 32], strides = [1, 1]} : vector<2x96xf32> to vector<2x32xf32>
    %274 = vector.extract_strided_slice %261 {offsets = [0, 64], sizes = [2, 32], strides = [1, 1]} : vector<2x96xf32> to vector<2x32xf32>
    %275 = vector.broadcast %208 : vector<1x32xf32> to vector<2x32xf32>
    %276 = arith.addf %274, %275 : vector<2x32xf32>
    %277 = arith.mulf %271, %276 : vector<2x32xf32>
    %278 = arith.addf %273, %277 : vector<2x32xf32>
    %279 = math.tanh %278 : vector<2x32xf32>
    %280 = arith.subf %259, %279 : vector<2x32xf32>
    %281 = arith.mulf %272, %280 : vector<2x32xf32>
    %282 = arith.addf %279, %281 : vector<2x32xf32>
    %c4_59 = arith.constant 4 : index
    %c0_60 = arith.constant 0 : index
    %283 = vector.load %arg9[%c4_59, %c0_60] : memref<16x32xf32, #tpu.memory_space<vmem>>, vector<2x32xf32>
    tpu.vector_store %arg9[%c4_59, %c0_60], %282 {strides = array<i32>} : memref<16x32xf32, #tpu.memory_space<vmem>>, vector<2x32xf32>,
    %cst_61 = arith.constant dense<0.000000e+00> : vector<2x96xf32>
    %284 = tpu.matmul %282, %204, %cst_61 {dimension_numbers = #tpu.dot_dimension_numbers<[1], [0], [0], [1], [0, 0, 1, 1], [], []>} : vector<2x32xf32>, vector<32x96xf32>, vector<2x96xf32> -> vector<2x96xf32>
    %285 = vector.extract_strided_slice %212 {offsets = [6, 0], sizes = [2, 96], strides = [1, 1]} : vector<16x96xf32> to vector<2x96xf32>
    %286 = vector.extract_strided_slice %285 {offsets = [0, 0], sizes = [2, 64], strides = [1, 1]} : vector<2x96xf32> to vector<2x64xf32>
    %287 = vector.extract_strided_slice %284 {offsets = [0, 0], sizes = [2, 64], strides = [1, 1]} : vector<2x96xf32> to vector<2x64xf32>
    %288 = arith.addf %286, %287 : vector<2x64xf32>
    %289 = arith.negf %288 : vector<2x64xf32>
    %290 = math.exp %289 : vector<2x64xf32>
    %cst_62 = arith.constant 1.000000e+00 : f32
    %291 = vector.broadcast %cst_62 : f32 to vector<2x64xf32>
    %292 = arith.addf %291, %290 : vector<2x64xf32>
    %293 = arith.divf %291, %292 : vector<2x64xf32>
    %294 = vector.extract_strided_slice %293 {offsets = [0, 0], sizes = [2, 32], strides = [1, 1]} : vector<2x64xf32> to vector<2x32xf32>
    %295 = vector.extract_strided_slice %293 {offsets = [0, 32], sizes = [2, 32], strides = [1, 1]} : vector<2x64xf32> to vector<2x32xf32>
    %296 = vector.extract_strided_slice %285 {offsets = [0, 64], sizes = [2, 32], strides = [1, 1]} : vector<2x96xf32> to vector<2x32xf32>
    %297 = vector.extract_strided_slice %284 {offsets = [0, 64], sizes = [2, 32], strides = [1, 1]} : vector<2x96xf32> to vector<2x32xf32>
    %298 = vector.broadcast %208 : vector<1x32xf32> to vector<2x32xf32>
    %299 = arith.addf %297, %298 : vector<2x32xf32>
    %300 = arith.mulf %294, %299 : vector<2x32xf32>
    %301 = arith.addf %296, %300 : vector<2x32xf32>
    %302 = math.tanh %301 : vector<2x32xf32>
    %303 = arith.subf %282, %302 : vector<2x32xf32>
    %304 = arith.mulf %295, %303 : vector<2x32xf32>
    %305 = arith.addf %302, %304 : vector<2x32xf32>
    %c6_63 = arith.constant 6 : index
    %c0_64 = arith.constant 0 : index
    %306 = vector.load %arg9[%c6_63, %c0_64] : memref<16x32xf32, #tpu.memory_space<vmem>>, vector<2x32xf32>
    tpu.vector_store %arg9[%c6_63, %c0_64], %305 {strides = array<i32>} : memref<16x32xf32, #tpu.memory_space<vmem>>, vector<2x32xf32>,
    %cst_65 = arith.constant dense<0.000000e+00> : vector<2x96xf32>
    %307 = tpu.matmul %305, %204, %cst_65 {dimension_numbers = #tpu.dot_dimension_numbers<[1], [0], [0], [1], [0, 0, 1, 1], [], []>} : vector<2x32xf32>, vector<32x96xf32>, vector<2x96xf32> -> vector<2x96xf32>
    %308 = vector.extract_strided_slice %212 {offsets = [8, 0], sizes = [2, 96], strides = [1, 1]} : vector<16x96xf32> to vector<2x96xf32>
    %309 = vector.extract_strided_slice %308 {offsets = [0, 0], sizes = [2, 64], strides = [1, 1]} : vector<2x96xf32> to vector<2x64xf32>
    %310 = vector.extract_strided_slice %307 {offsets = [0, 0], sizes = [2, 64], strides = [1, 1]} : vector<2x96xf32> to vector<2x64xf32>
    %311 = arith.addf %309, %310 : vector<2x64xf32>
    %312 = arith.negf %311 : vector<2x64xf32>
    %313 = math.exp %312 : vector<2x64xf32>
    %cst_66 = arith.constant 1.000000e+00 : f32
    %314 = vector.broadcast %cst_66 : f32 to vector<2x64xf32>
    %315 = arith.addf %314, %313 : vector<2x64xf32>
    %316 = arith.divf %314, %315 : vector<2x64xf32>
    %317 = vector.extract_strided_slice %316 {offsets = [0, 0], sizes = [2, 32], strides = [1, 1]} : vector<2x64xf32> to vector<2x32xf32>
    %318 = vector.extract_strided_slice %316 {offsets = [0, 32], sizes = [2, 32], strides = [1, 1]} : vector<2x64xf32> to vector<2x32xf32>
    %319 = vector.extract_strided_slice %308 {offsets = [0, 64], sizes = [2, 32], strides = [1, 1]} : vector<2x96xf32> to vector<2x32xf32>
    %320 = vector.extract_strided_slice %307 {offsets = [0, 64], sizes = [2, 32], strides = [1, 1]} : vector<2x96xf32> to vector<2x32xf32>
    %321 = vector.broadcast %208 : vector<1x32xf32> to vector<2x32xf32>
    %322 = arith.addf %320, %321 : vector<2x32xf32>
    %323 = arith.mulf %317, %322 : vector<2x32xf32>
    %324 = arith.addf %319, %323 : vector<2x32xf32>
    %325 = math.tanh %324 : vector<2x32xf32>
    %326 = arith.subf %305, %325 : vector<2x32xf32>
    %327 = arith.mulf %318, %326 : vector<2x32xf32>
    %328 = arith.addf %325, %327 : vector<2x32xf32>
    %c8_67 = arith.constant 8 : index
    %c0_68 = arith.constant 0 : index
    %329 = vector.load %arg9[%c8_67, %c0_68] : memref<16x32xf32, #tpu.memory_space<vmem>>, vector<2x32xf32>
    tpu.vector_store %arg9[%c8_67, %c0_68], %328 {strides = array<i32>} : memref<16x32xf32, #tpu.memory_space<vmem>>, vector<2x32xf32>,
    %cst_69 = arith.constant dense<0.000000e+00> : vector<2x96xf32>
    %330 = tpu.matmul %328, %204, %cst_69 {dimension_numbers = #tpu.dot_dimension_numbers<[1], [0], [0], [1], [0, 0, 1, 1], [], []>} : vector<2x32xf32>, vector<32x96xf32>, vector<2x96xf32> -> vector<2x96xf32>
    %331 = vector.extract_strided_slice %212 {offsets = [10, 0], sizes = [2, 96], strides = [1, 1]} : vector<16x96xf32> to vector<2x96xf32>
    %332 = vector.extract_strided_slice %331 {offsets = [0, 0], sizes = [2, 64], strides = [1, 1]} : vector<2x96xf32> to vector<2x64xf32>
    %333 = vector.extract_strided_slice %330 {offsets = [0, 0], sizes = [2, 64], strides = [1, 1]} : vector<2x96xf32> to vector<2x64xf32>
    %334 = arith.addf %332, %333 : vector<2x64xf32>
    %335 = arith.negf %334 : vector<2x64xf32>
    %336 = math.exp %335 : vector<2x64xf32>
    %cst_70 = arith.constant 1.000000e+00 : f32
    %337 = vector.broadcast %cst_70 : f32 to vector<2x64xf32>
    %338 = arith.addf %337, %336 : vector<2x64xf32>
    %339 = arith.divf %337, %338 : vector<2x64xf32>
    %340 = vector.extract_strided_slice %339 {offsets = [0, 0], sizes = [2, 32], strides = [1, 1]} : vector<2x64xf32> to vector<2x32xf32>
    %341 = vector.extract_strided_slice %339 {offsets = [0, 32], sizes = [2, 32], strides = [1, 1]} : vector<2x64xf32> to vector<2x32xf32>
    %342 = vector.extract_strided_slice %331 {offsets = [0, 64], sizes = [2, 32], strides = [1, 1]} : vector<2x96xf32> to vector<2x32xf32>
    %343 = vector.extract_strided_slice %330 {offsets = [0, 64], sizes = [2, 32], strides = [1, 1]} : vector<2x96xf32> to vector<2x32xf32>
    %344 = vector.broadcast %208 : vector<1x32xf32> to vector<2x32xf32>
    %345 = arith.addf %343, %344 : vector<2x32xf32>
    %346 = arith.mulf %340, %345 : vector<2x32xf32>
    %347 = arith.addf %342, %346 : vector<2x32xf32>
    %348 = math.tanh %347 : vector<2x32xf32>
    %349 = arith.subf %328, %348 : vector<2x32xf32>
    %350 = arith.mulf %341, %349 : vector<2x32xf32>
    %351 = arith.addf %348, %350 : vector<2x32xf32>
    %c10_71 = arith.constant 10 : index
    %c0_72 = arith.constant 0 : index
    %352 = vector.load %arg9[%c10_71, %c0_72] : memref<16x32xf32, #tpu.memory_space<vmem>>, vector<2x32xf32>
    tpu.vector_store %arg9[%c10_71, %c0_72], %351 {strides = array<i32>} : memref<16x32xf32, #tpu.memory_space<vmem>>, vector<2x32xf32>,
    %cst_73 = arith.constant dense<0.000000e+00> : vector<2x96xf32>
    %353 = tpu.matmul %351, %204, %cst_73 {dimension_numbers = #tpu.dot_dimension_numbers<[1], [0], [0], [1], [0, 0, 1, 1], [], []>} : vector<2x32xf32>, vector<32x96xf32>, vector<2x96xf32> -> vector<2x96xf32>
    %354 = vector.extract_strided_slice %212 {offsets = [12, 0], sizes = [2, 96], strides = [1, 1]} : vector<16x96xf32> to vector<2x96xf32>
    %355 = vector.extract_strided_slice %354 {offsets = [0, 0], sizes = [2, 64], strides = [1, 1]} : vector<2x96xf32> to vector<2x64xf32>
    %356 = vector.extract_strided_slice %353 {offsets = [0, 0], sizes = [2, 64], strides = [1, 1]} : vector<2x96xf32> to vector<2x64xf32>
    %357 = arith.addf %355, %356 : vector<2x64xf32>
    %358 = arith.negf %357 : vector<2x64xf32>
    %359 = math.exp %358 : vector<2x64xf32>
    %cst_74 = arith.constant 1.000000e+00 : f32
    %360 = vector.broadcast %cst_74 : f32 to vector<2x64xf32>
    %361 = arith.addf %360, %359 : vector<2x64xf32>
    %362 = arith.divf %360, %361 : vector<2x64xf32>
    %363 = vector.extract_strided_slice %362 {offsets = [0, 0], sizes = [2, 32], strides = [1, 1]} : vector<2x64xf32> to vector<2x32xf32>
    %364 = vector.extract_strided_slice %362 {offsets = [0, 32], sizes = [2, 32], strides = [1, 1]} : vector<2x64xf32> to vector<2x32xf32>
    %365 = vector.extract_strided_slice %354 {offsets = [0, 64], sizes = [2, 32], strides = [1, 1]} : vector<2x96xf32> to vector<2x32xf32>
    %366 = vector.extract_strided_slice %353 {offsets = [0, 64], sizes = [2, 32], strides = [1, 1]} : vector<2x96xf32> to vector<2x32xf32>
    %367 = vector.broadcast %208 : vector<1x32xf32> to vector<2x32xf32>
    %368 = arith.addf %366, %367 : vector<2x32xf32>
    %369 = arith.mulf %363, %368 : vector<2x32xf32>
    %370 = arith.addf %365, %369 : vector<2x32xf32>
    %371 = math.tanh %370 : vector<2x32xf32>
    %372 = arith.subf %351, %371 : vector<2x32xf32>
    %373 = arith.mulf %364, %372 : vector<2x32xf32>
    %374 = arith.addf %371, %373 : vector<2x32xf32>
    %c12_75 = arith.constant 12 : index
    %c0_76 = arith.constant 0 : index
    %375 = vector.load %arg9[%c12_75, %c0_76] : memref<16x32xf32, #tpu.memory_space<vmem>>, vector<2x32xf32>
    tpu.vector_store %arg9[%c12_75, %c0_76], %374 {strides = array<i32>} : memref<16x32xf32, #tpu.memory_space<vmem>>, vector<2x32xf32>,
    %cst_77 = arith.constant dense<0.000000e+00> : vector<2x96xf32>
    %376 = tpu.matmul %374, %204, %cst_77 {dimension_numbers = #tpu.dot_dimension_numbers<[1], [0], [0], [1], [0, 0, 1, 1], [], []>} : vector<2x32xf32>, vector<32x96xf32>, vector<2x96xf32> -> vector<2x96xf32>
    %377 = vector.extract_strided_slice %212 {offsets = [14, 0], sizes = [2, 96], strides = [1, 1]} : vector<16x96xf32> to vector<2x96xf32>
    %378 = vector.extract_strided_slice %377 {offsets = [0, 0], sizes = [2, 64], strides = [1, 1]} : vector<2x96xf32> to vector<2x64xf32>
    %379 = vector.extract_strided_slice %376 {offsets = [0, 0], sizes = [2, 64], strides = [1, 1]} : vector<2x96xf32> to vector<2x64xf32>
    %380 = arith.addf %378, %379 : vector<2x64xf32>
    %381 = arith.negf %380 : vector<2x64xf32>
    %382 = math.exp %381 : vector<2x64xf32>
    %cst_78 = arith.constant 1.000000e+00 : f32
    %383 = vector.broadcast %cst_78 : f32 to vector<2x64xf32>
    %384 = arith.addf %383, %382 : vector<2x64xf32>
    %385 = arith.divf %383, %384 : vector<2x64xf32>
    %386 = vector.extract_strided_slice %385 {offsets = [0, 0], sizes = [2, 32], strides = [1, 1]} : vector<2x64xf32> to vector<2x32xf32>
    %387 = vector.extract_strided_slice %385 {offsets = [0, 32], sizes = [2, 32], strides = [1, 1]} : vector<2x64xf32> to vector<2x32xf32>
    %388 = vector.extract_strided_slice %377 {offsets = [0, 64], sizes = [2, 32], strides = [1, 1]} : vector<2x96xf32> to vector<2x32xf32>
    %389 = vector.extract_strided_slice %376 {offsets = [0, 64], sizes = [2, 32], strides = [1, 1]} : vector<2x96xf32> to vector<2x32xf32>
    %390 = vector.broadcast %208 : vector<1x32xf32> to vector<2x32xf32>
    %391 = arith.addf %389, %390 : vector<2x32xf32>
    %392 = arith.mulf %386, %391 : vector<2x32xf32>
    %393 = arith.addf %388, %392 : vector<2x32xf32>
    %394 = math.tanh %393 : vector<2x32xf32>
    %395 = arith.subf %374, %394 : vector<2x32xf32>
    %396 = arith.mulf %387, %395 : vector<2x32xf32>
    %397 = arith.addf %394, %396 : vector<2x32xf32>
    %c14_79 = arith.constant 14 : index
    %c0_80 = arith.constant 0 : index
    %398 = vector.load %arg9[%c14_79, %c0_80] : memref<16x32xf32, #tpu.memory_space<vmem>>, vector<2x32xf32>
    tpu.vector_store %arg9[%c14_79, %c0_80], %397 {strides = array<i32>} : memref<16x32xf32, #tpu.memory_space<vmem>>, vector<2x32xf32>,
    %c1_81 = arith.constant 1 : index
    %c0_82 = arith.constant 0 : index
    %c0_83 = arith.constant 0 : index
    %399 = vector.load %arg8[%c1_81, %c0_82, %c0_83] : memref<2x2x32xf32, #tpu.memory_space<vmem>>, vector<1x2x32xf32>
    %400 = vector.shape_cast %399 : vector<1x2x32xf32> to vector<2x32xf32>
    %401 = vector.shape_cast %397 : vector<2x32xf32> to vector<1x2x32xf32>
    tpu.vector_store %arg8[%c1_81, %c0_82, %c0_83], %401 {strides = array<i32>} : memref<2x2x32xf32, #tpu.memory_space<vmem>>, vector<1x2x32xf32>,
    %c0_84 = arith.constant 0 : index
    %c0_85 = arith.constant 0 : index
    %402 = vector.load %arg6[%c0_84, %c0_85] : memref<3x32xf32, #tpu.memory_space<vmem>>, vector<3x32xf32>
    %c0_86 = arith.constant 0 : index
    %c0_87 = arith.constant 0 : index
    %403 = vector.load %arg9[%c0_86, %c0_87] : memref<16x32xf32, #tpu.memory_space<vmem>>, vector<16x32xf32>
    %c0_88 = arith.constant 0 : index
    %c0_89 = arith.constant 0 : index
    %404 = vector.load %arg5[%c0_88, %c0_89] : memref<32x32xf32, #tpu.memory_space<vmem>>, vector<32x32xf32>
    %cst_90 = arith.constant dense<0.000000e+00> : vector<16x32xf32>
    %405 = tpu.matmul %403, %404, %cst_90 {dimension_numbers = #tpu.dot_dimension_numbers<[1], [0], [0], [1], [0, 0, 1, 1], [], []>} : vector<16x32xf32>, vector<32x32xf32>, vector<16x32xf32> -> vector<16x32xf32>
    %406 = vector.extract_strided_slice %402 {offsets = [0, 0], sizes = [1, 32], strides = [1, 1]} : vector<3x32xf32> to vector<1x32xf32>
    %407 = vector.broadcast %406 : vector<1x32xf32> to vector<16x32xf32>
    %408 = arith.addf %405, %407 : vector<16x32xf32>
    %cst_91 = arith.constant dense<0.000000e+00> : vector<16xf32>
    %409 = vector.multi_reduction <add>, %408, %cst_91 [1] : vector<16x32xf32> to vector<16xf32>
    %410 = vector.shape_cast %409 : vector<16xf32> to vector<16x1xf32>
    %cst_92 = arith.constant 3.200000e+01 : f32
    %411 = vector.broadcast %cst_92 : f32 to vector<16x1xf32>
    %412 = arith.divf %410, %411 : vector<16x1xf32>
    %413 = vector.broadcast %412 : vector<16x1xf32> to vector<16x32xf32>
    %414 = arith.subf %408, %413 : vector<16x32xf32>
    %415 = arith.mulf %414, %414 : vector<16x32xf32>
    %cst_93 = arith.constant dense<0.000000e+00> : vector<16xf32>
    %416 = vector.multi_reduction <add>, %415, %cst_93 [1] : vector<16x32xf32> to vector<16xf32>
    %417 = vector.shape_cast %416 : vector<16xf32> to vector<16x1xf32>
    %cst_94 = arith.constant 3.200000e+01 : f32
    %418 = vector.broadcast %cst_94 : f32 to vector<16x1xf32>
    %419 = arith.divf %417, %418 : vector<16x1xf32>
    %420 = vector.broadcast %412 : vector<16x1xf32> to vector<16x32xf32>
    %421 = arith.subf %408, %420 : vector<16x32xf32>
    %cst_95 = arith.constant 9.99999974E-6 : f32
    %422 = vector.broadcast %cst_95 : f32 to vector<16x1xf32>
    %423 = arith.addf %419, %422 : vector<16x1xf32>
    %424 = math.rsqrt %423 : vector<16x1xf32>
    %425 = vector.broadcast %424 : vector<16x1xf32> to vector<16x32xf32>
    %426 = arith.mulf %421, %425 : vector<16x32xf32>
    %427 = vector.extract_strided_slice %402 {offsets = [1, 0], sizes = [1, 32], strides = [1, 1]} : vector<3x32xf32> to vector<1x32xf32>
    %428 = vector.broadcast %427 : vector<1x32xf32> to vector<16x32xf32>
    %429 = arith.mulf %426, %428 : vector<16x32xf32>
    %430 = vector.extract_strided_slice %402 {offsets = [2, 0], sizes = [1, 32], strides = [1, 1]} : vector<3x32xf32> to vector<1x32xf32>
    %431 = vector.broadcast %430 : vector<1x32xf32> to vector<16x32xf32>
    %432 = arith.addf %429, %431 : vector<16x32xf32>
    %c0_96 = arith.constant 0 : index
    %c0_97 = arith.constant 0 : index
    %433 = vector.load %arg7[%c0_96, %c0_97] : memref<16x32xf32, #tpu.memory_space<vmem>>, vector<16x32xf32>
    tpu.vector_store %arg7[%c0_96, %c0_97], %432 {strides = array<i32>} : memref<16x32xf32, #tpu.memory_space<vmem>>, vector<16x32xf32>,
    return
  }
  func.func @transform_0(%arg0: i32) -> (i32, i32) {
    %c0_i32 = arith.constant 0 : i32
    %c0_i32_0 = arith.constant 0 : i32
    %c0_i32_1 = arith.constant 0 : i32
    return %c0_i32, %c0_i32_0 : i32, i32
  }
  func.func @transform_1(%arg0: i32) -> (i32, i32, i32) {
    %c0_i32 = arith.constant 0 : i32
    %c0_i32_0 = arith.constant 0 : i32
    %c0_i32_1 = arith.constant 0 : i32
    %c0_i32_2 = arith.constant 0 : i32
    return %c0_i32, %c0_i32_0, %c0_i32_1 : i32, i32, i32
  }
  func.func @transform_2(%arg0: i32) -> (i32, i32, i32) {
    %c0_i32 = arith.constant 0 : i32
    %c0_i32_0 = arith.constant 0 : i32
    %c0_i32_1 = arith.constant 0 : i32
    %c0_i32_2 = arith.constant 0 : i32
    return %c0_i32, %c0_i32_0, %c0_i32_1 : i32, i32, i32
  }
  func.func @transform_3(%arg0: i32) -> (i32, i32, i32) {
    %c0_i32 = arith.constant 0 : i32
    %c0_i32_0 = arith.constant 0 : i32
    %c0_i32_1 = arith.constant 0 : i32
    %c0_i32_2 = arith.constant 0 : i32
    return %c0_i32, %c0_i32_0, %c0_i32_1 : i32, i32, i32
  }
  func.func @transform_4(%arg0: i32) -> (i32, i32) {
    %c0_i32 = arith.constant 0 : i32
    %c0_i32_0 = arith.constant 0 : i32
    %c0_i32_1 = arith.constant 0 : i32
    return %c0_i32, %c0_i32_0 : i32, i32
  }
  func.func @transform_5(%arg0: i32) -> (i32, i32) {
    %c0_i32 = arith.constant 0 : i32
    %c0_i32_0 = arith.constant 0 : i32
    %c0_i32_1 = arith.constant 0 : i32
    return %c0_i32, %c0_i32_0 : i32, i32
  }
  func.func @transform_6(%arg0: i32) -> (i32, i32) {
    %c0_i32 = arith.constant 0 : i32
    %c0_i32_0 = arith.constant 0 : i32
    %c0_i32_1 = arith.constant 0 : i32
    return %c0_i32, %c0_i32_0 : i32, i32
  }
  func.func @transform_7(%arg0: i32) -> (i32, i32, i32) {
    %c0_i32 = arith.constant 0 : i32
    %c0_i32_0 = arith.constant 0 : i32
    %c0_i32_1 = arith.constant 0 : i32
    %c0_i32_2 = arith.constant 0 : i32
    return %c0_i32, %c0_i32_0, %c0_i32_1 : i32, i32, i32
  }
}

</mosaic_0001>

<bundles_post_ra>
// kernel: gru_traj_encoder_forward.1
= control target key start
LH: loop header
LB: loop body
LE: loop exit
PB: predicated region body
PF: predicated region fallthrough
CT: control target
= control target key end

     0   :  { %v2729_v3 = vmov 0.0   ;;  %vm41_vm0 = vcmask 130048   ;;  %s3296_s0 = inlined_call_operand.vmem [shape: f32[16,16], index: 0, kind: input, shape index: {}]   ;;  %s3297_s1 = inlined_call_operand.vmem [shape: f32[2,2,32], index: 1, kind: input, shape index: {}]   ;;  %s3298_s2 = inlined_call_operand.vmem [shape: f32[2,64,96], index: 2, kind: input, shape index: {}]   ;;  %s3299_s3 = inlined_call_operand.vmem [shape: f32[2,1,128], index: 3, kind: input, shape index: {}]   ;;  %s3300_s4 = inlined_call_operand.vmem [shape: f32[32,32], index: 4, kind: input, shape index: {}]   ;;  %s3301_s5 = inlined_call_operand.vmem [shape: f32[3,32], index: 5, kind: input, shape index: {}]   ;;  %s3302_s6 = inlined_call_operand.vmem [shape: f32[16,32], index: 6, kind: output, shape index: {0}]   ;;  %s3303_s7 = inlined_call_operand.hbm [shape: f32[2,2,32], index: 7, kind: output, shape index: {1}]  }
   0x1   :  { %v27_v0 = vld [vmem:[%s3298_s2 + $0x8] sm:$0xff]  ;;  %v2782_v1 = vld [vmem:[%s3298_s2 + $0x38] sm:$0xff]  ;;  %v26_v2 = vld [vmem:[%s3298_s2] sm:$0xff]  ;;  %2402 = vmatprep.subr.mxu1 %v2729_v3 }
   0x2   :  { %2395 = vmatprep.subr.mxu0 %v27_v0  ;;  %v33_v4 = vld [vmem:[%s3296_s0] sm:$0xff]  ;;  %2403 = vmatpush3.msra.mxu1 %v2782_v1  ;;  %v2795_v5 = vld [vmem:[%s3298_s2 + $0x30] sm:$0xff]  ;;  %v34_v6 = vld [vmem:[%s3296_s0 + $0x8] sm:$0xff] }
   0x3   :  { %2396 = vmatpush3.msra.mxu0 %v27_v0  ;;  %2404 = vmatprep.subr.mxu1 %v2729_v3 }
   0x4   :  { %2397 = vmatprep.subr.mxu0 %v26_v2 }
   0x5   :  { %13 = vsyncpa [#allocation4], 0  ;;  %2398 = vmatpush3.msra.mxu0 %v26_v2  ;;  %2399 = vmatprep.mubr.msk.f32.mxu0 %vm41_vm0, %v33_v4  ;;  %v2804_v7 = vld [vmem:[%s3298_s2 + $0x28] sm:$0xff]  ;;  %v2809_v8 = vld [vmem:[%s3299_s3] ss:$0 sm:$0xff]  ;;  %vm2730_vm1 = vmmov 0  }
   0x6   :  { %2405 = vmatpush3.msra.mxu1 %v2795_v5  ;;  %2400 = vmatmul.mubr.msk.f32.vlgmr.msra.gmra.mxu0 %vm41_vm0, %v34_v6  ;;  %v2816_v9 = vld [vmem:[%s3298_s2 + $0x20] sm:$0xff]  ;;  %vm124_vm2 = vcmask 261120   ;;  %s2731_s20 = smov 96   ;;  %s2732_s21 = smov 64   ;;  %vm239_vm3 = vcmask 254976   ;;  %vm355_vm4 = vcmask 257026  }
   0x7   :  { %2406 = vmatprep.subr.mxu1 %v2729_v3  ;;  %2410 = vmatprep.mubr.msk.f32.mxu1 %vm2730_vm1, %v2729_v3  ;;  %v123_v10 = vld [vmem:[%s3297_s1] sm:$0x3]  ;;  %s2733_s22 = smov 32   ;;  %vm593_vm5 = vcmask 261126   ;;  %vm474_vm6 = vcmask 259076  }
   0x8   :  { %2407 = vmatpush3.msra.mxu1 %v2804_v7  ;;  %205 = vrot.lane.b32.xlu0 %v2809_v8, %s2731_s20 }
   0x9   :  { %2408 = vmatprep.subr.mxu1 %v2729_v3  ;;  %2413 = vmatprep.subr.mxu0 %v2729_v3 }
   0xa   :  { %2409 = vmatpush3.msra.mxu1 %v2816_v9  ;;  %2414 = vmatpush3.msra.mxu0 %v2782_v1 }
   0xb   :  { %2411 = vmatmul.mubr.msk.f32.vlgmr.msra.gmra.mxu1 %vm124_vm2, %v123_v10  ;;  %2415 = vmatprep.subr.mxu0 %v2729_v3 }
   0xc   :  { %2416 = vmatpush3.msra.mxu0 %v2795_v5  ;;  %2421 = vmatprep.mubr.msk.f32.mxu0 %vm2730_vm1, %v2729_v3 }
   0xd   :  { %2417 = vmatprep.subr.mxu0 %v2729_v3  ;;  %2424 = vmatprep.subr.mxu1 %v2729_v3 }
   0xe   :  { %2418 = vmatpush3.msra.mxu0 %v2804_v7  ;;  %2425 = vmatpush3.msra.mxu1 %v2782_v1 }
   0xf   :  { %2419 = vmatprep.subr.mxu0 %v2729_v3  ;;  %2426 = vmatprep.subr.mxu1 %v2729_v3 }
  0x10   :  { %2420 = vmatpush3.msra.mxu0 %v2816_v9  ;;  %2427 = vmatpush3.msra.mxu1 %v2795_v5 }
  0x11   :  { %2428 = vmatprep.subr.mxu1 %v2729_v3  ;;  %2432 = vmatprep.mubr.msk.f32.mxu1 %vm2730_vm1, %v2729_v3 }
  0x12   :  { %2429 = vmatpush3.msra.mxu1 %v2804_v7  ;;  %2435 = vmatprep.subr.mxu0 %v2729_v3 }
  0x13   :  { %2430 = vmatprep.subr.mxu1 %v2729_v3 }
  0x14   :  { %2431 = vmatpush3.msra.mxu1 %v2816_v9 }
  0x15   :  { %2446 = vmatprep.subr.mxu1 %v2729_v3 }
  0x7a   :  { %v2851_v11 = vpop.permute.xlu0 %205 }
  0xc6   :  { %v2855_v15 = vpop.f32.mrf.mxu0 }
  0xc8   :  { %v114_v16 = vpop.f32.mrf.mxu0 }
  0xc9   :  { %v2858_v17 = vadd.f32 %v2809_v8, %v114_v16 }
  0xcb   :  { %v194_v12 = vpop.f32.mrf.mxu1 }
  0xcc   :  { %v208_v13 = vadd.f32 %v2851_v11, %v194_v12  ;;  %v198_v18 = vadd.f32 %v194_v12, %v2858_v17 }
  0xcd   :  { %v2412_v14 = vpop.f32.mrf.mxu1 }
  0xce   :  { %210 = vrot.lane.b32.xlu0 %v208_v13, %s2732_s21  ;;  %v2253_v19 = vmul.f32 -1.442695, %v198_v18 }
  0xd0   :  { %2607 = vpow2.f32 %v2253_v19 }
  0xdd   :  { %v2608_v20 = vpop.eup %2607 }
  0xde   :  { %v202_v21 = vadd.f32 1.0, %v2608_v20 }
  0xe0   :  { %2609 = vrcp.f32 %v202_v21 }
  0xed   :  { %v2610_v22 = vpop.eup %2609 }
 0x140   :  { %v211_v23 = vpop.permute.xlu0 %210 }
 0x141   :  { %v213_v24 = vmul.f32 %v2610_v22, %v211_v23 }
 0x143   :  { %215 = vrot.lane.b32.xlu1 %v213_v24, %s2732_s21 }
 0x1b5   :  { %v216_v25 = vpop.permute.xlu1 %215 }
 0x1b6   :  { %v218_v26 = vadd.f32 %v216_v25, %v2858_v17 }
 0x1b8   :  { %2611 = vtanh.f32 %v218_v26 }
 0x1c5   :  { %v2612_v27 = vpop.eup %2611 }
 0x1c6   :  { %221 = vrot.lane.b32.xlu1 %v2612_v27, %s2732_s21 }
 0x238   :  { %v222_v28 = vpop.permute.xlu1 %221 }
 0x239   :  { %v224_v29 = vsub.f32 %v123_v10, %v222_v28 }
 0x23b   :  { %226 = vrot.lane.b32.xlu0 %v224_v29, %s2733_s22 }
 0x2ad   :  { %v227_v30 = vpop.permute.xlu0 %226 }
 0x2ae   :  { %v229_v31 = vmul.f32 %v2610_v22, %v227_v30 }
 0x2b0   :  { %231 = vrot.lane.b32.xlu1 %v229_v31, %s2733_s22 }
 0x322   :  { %v232_v32 = vpop.permute.xlu1 %231 }
 0x323   :  { %v234_v33 = vadd.f32 %v2612_v27, %v232_v32 }
 0x325   :  { %236 = vrot.lane.b32.xlu0 %v234_v33, %s2732_s21 }
 0x397   :  { %v237_v34 = vpop.permute.xlu0 %236 }
 0x398   :  { %240 = vst.msk [vmem:[#allocation2] sm:$0x3] %vm239_vm3, %v237_v34  ;;  %2422 = vmatmul.mubr.msk.f32.vlgmr.msra.gmra.mxu0 %vm124_vm2, %v237_v34 }
 0x399   :  { %2436 = vmatpush3.msra.mxu0 %v2782_v1  ;;  %2443 = vmatprep.mubr.msk.f32.mxu0 %vm2730_vm1, %v2729_v3 }
 0x39a   :  { %2437 = vmatprep.subr.mxu0 %v2729_v3 }
 0x39b   :  { %2438 = vmatpush3.msra.mxu0 %v2795_v5 }
 0x39c   :  { %2439 = vmatprep.subr.mxu0 %v2729_v3 }
 0x39d   :  { %2440 = vmatpush3.msra.mxu0 %v2804_v7 }
 0x39e   :  { %2441 = vmatprep.subr.mxu0 %v2729_v3 }
 0x39f   :  { %2442 = vmatpush3.msra.mxu0 %v2816_v9 }
 0x3a0   :  { %2457 = vmatprep.subr.mxu0 %v2729_v3 }
 0x458   :  { %v309_v35 = vpop.f32.mrf.mxu0 }
 0x459   :  { %v323_v36 = vadd.f32 %v309_v35, %v2851_v11  ;;  %v314_v39 = vrot.slane %v309_v35, 6 }
 0x45a   :  { %v2423_v37 = vpop.f32.mrf.mxu0 }
 0x45b   :  { %v325_v38 = vrot.slane %v323_v36, 6  ;;  %v316_v40 = vadd.f32 %v314_v39, %v2858_v17 }
 0x45d   :  { %326 = vrot.lane.b32.xlu1 %v325_v38, %s2732_s21  ;;  %v2255_v41 = vmul.f32 -1.442695, %v316_v40 }
 0x45f   :  { %2613 = vpow2.f32 %v2255_v41 }
 0x46c   :  { %v2614_v42 = vpop.eup %2613 }
 0x46d   :  { %v320_v43 = vadd.f32 1.0, %v2614_v42 }
 0x46f   :  { %2615 = vrcp.f32 %v320_v43 }
 0x47c   :  { %v2616_v44 = vpop.eup %2615 }
 0x4cf   :  { %v327_v45 = vpop.permute.xlu1 %326 }
 0x4d0   :  { %v329_v46 = vmul.f32 %v2616_v44, %v327_v45 }
 0x4d2   :  { %331 = vrot.lane.b32.xlu0 %v329_v46, %s2732_s21 }
 0x544   :  { %v332_v47 = vpop.permute.xlu0 %331 }
 0x545   :  { %v334_v48 = vadd.f32 %v332_v47, %v2858_v17 }
 0x547   :  { %2617 = vtanh.f32 %v334_v48 }
 0x554   :  { %v2618_v49 = vpop.eup %2617 }
 0x555   :  { %v337_v50 = vrot.slane %v2618_v49, 2 }
 0x557   :  { %v339_v51 = vsub.f32 %v234_v33, %v337_v50 }
 0x559   :  { %v341_v52 = vrot.slane %v339_v51, 6 }
 0x55b   :  { %342 = vrot.lane.b32.xlu1 %v341_v52, %s2731_s20 }
 0x5cd   :  { %v343_v53 = vpop.permute.xlu1 %342 }
 0x5ce   :  { %v345_v54 = vmul.f32 %v2616_v44, %v343_v53 }
 0x5d0   :  { %347 = vrot.lane.b32.xlu0 %v345_v54, %s2733_s22  ;;  %v2950_v54 = vadd.f32 %v2855_v15, %v2809_v8 }
 0x642   :  { %v348_v55 = vpop.permute.xlu0 %347 }
 0x643   :  { %v2886_v56 = vadd.f32 %v2618_v49, %v348_v55 }
 0x645   :  { %v357_v57 = vrot.slane %v2886_v56, 2 }
 0x647   :  { %358 = vrot.lane.b32.xlu1 %v357_v57, %s2732_s21 }
 0x6b9   :  { %v359_v58 = vpop.permute.xlu1 %358 }
 0x6ba   :  { %2433 = vmatmul.mubr.msk.f32.vlgmr.msra.gmra.mxu1 %vm124_vm2, %v359_v58 }
 0x6bb   :  { %2447 = vmatpush3.msra.mxu1 %v2782_v1  ;;  %2454 = vmatprep.mubr.msk.f32.mxu1 %vm2730_vm1, %v2729_v3 }
 0x6bc   :  { %2448 = vmatprep.subr.mxu1 %v2729_v3 }
 0x6bd   :  { %2449 = vmatpush3.msra.mxu1 %v2795_v5 }
 0x6be   :  { %2450 = vmatprep.subr.mxu1 %v2729_v3 }
 0x6bf   :  { %2451 = vmatpush3.msra.mxu1 %v2804_v7 }
 0x6c0   :  { %2452 = vmatprep.subr.mxu1 %v2729_v3 }
 0x6c1   :  { %2453 = vmatpush3.msra.mxu1 %v2816_v9 }
 0x6c2   :  { %2468 = vmatprep.subr.mxu1 %v2729_v3 }
 0x77a   :  { %v428_v59 = vpop.f32.mrf.mxu1 }
 0x77b   :  { %v442_v60 = vadd.f32 %v428_v59, %v2851_v11  ;;  %v433_v63 = vrot.slane %v428_v59, 4 }
 0x77c   :  { %v2434_v61 = vpop.f32.mrf.mxu1 }
 0x77d   :  { %v444_v62 = vrot.slane %v442_v60, 4  ;;  %v435_v0 = vadd.f32 %v433_v63, %v2858_v17 }
 0x77f   :  { %445 = vrot.lane.b32.xlu0 %v444_v62, %s2732_s21  ;;  %v2257_v2 = vmul.f32 -1.442695, %v435_v0 }
 0x781   :  { %2619 = vpow2.f32 %v2257_v2 }
 0x78e   :  { %v2620_v4 = vpop.eup %2619 }
 0x78f   :  { %v439_v6 = vadd.f32 1.0, %v2620_v4 }
 0x791   :  { %2621 = vrcp.f32 %v439_v6 }
 0x79e   :  { %v2622_v10 = vpop.eup %2621 }
 0x7f1   :  { %v446_v12 = vpop.permute.xlu0 %445 }
 0x7f2   :  { %v448_v13 = vmul.f32 %v2622_v10, %v446_v12 }
 0x7f4   :  { %450 = vrot.lane.b32.xlu1 %v448_v13, %s2732_s21 }
 0x866   :  { %v451_v14 = vpop.permute.xlu1 %450 }
 0x867   :  { %v453_v16 = vadd.f32 %v451_v14, %v2858_v17 }
 0x869   :  { %2623 = vtanh.f32 %v453_v16 }
 0x876   :  { %v2624_v18 = vpop.eup %2623 }
 0x877   :  { %v456_v19 = vrot.slane %v2624_v18, 2 }
 0x879   :  { %v458_v20 = vsub.f32 %v2886_v56, %v456_v19 }
 0x87b   :  { %v460_v21 = vrot.slane %v458_v20, 6 }
 0x87d   :  { %461 = vrot.lane.b32.xlu0 %v460_v21, %s2731_s20 }
 0x8ef   :  { %v462_v22 = vpop.permute.xlu0 %461 }
 0x8f0   :  { %v464_v23 = vmul.f32 %v2622_v10, %v462_v22 }
 0x8f2   :  { %466 = vrot.lane.b32.xlu1 %v464_v23, %s2733_s22 }
 0x964   :  { %v467_v24 = vpop.permute.xlu1 %466 }
 0x965   :  { %v2909_v25 = vadd.f32 %v2624_v18, %v467_v24 }
 0x967   :  { %v476_v26 = vrot.slane %v2909_v25, 4 }
 0x969   :  { %477 = vrot.lane.b32.xlu0 %v476_v26, %s2732_s21 }
 0x9db   :  { %v478_v27 = vpop.permute.xlu0 %477 }
 0x9dc   :  { %2444 = vmatmul.mubr.msk.f32.vlgmr.msra.gmra.mxu0 %vm124_vm2, %v478_v27 }
 0x9dd   :  { %2458 = vmatpush3.msra.mxu0 %v2782_v1  ;;  %2465 = vmatprep.mubr.msk.f32.mxu0 %vm2730_vm1, %v2729_v3 }
 0x9de   :  { %2459 = vmatprep.subr.mxu0 %v2729_v3 }
 0x9df   :  { %2460 = vmatpush3.msra.mxu0 %v2795_v5 }
 0x9e0   :  { %2461 = vmatprep.subr.mxu0 %v2729_v3 }
 0x9e1   :  { %2462 = vmatpush3.msra.mxu0 %v2804_v7 }
 0x9e2   :  { %2463 = vmatprep.subr.mxu0 %v2729_v3 }
 0x9e3   :  { %2464 = vmatpush3.msra.mxu0 %v2816_v9 }
 0x9e4   :  { %2479 = vmatprep.subr.mxu0 %v2729_v3 }
 0xa9c   :  { %v547_v28 = vpop.f32.mrf.mxu0 }
 0xa9d   :  { %v561_v29 = vadd.f32 %v547_v28, %v2851_v11  ;;  %v552_v32 = vrot.slane %v547_v28, 2 }
 0xa9e   :  { %v2445_v30 = vpop.f32.mrf.mxu0 }
 0xa9f   :  { %v563_v31 = vrot.slane %v561_v29, 2  ;;  %v554_v33 = vadd.f32 %v552_v32, %v2858_v17 }
 0xaa1   :  { %564 = vrot.lane.b32.xlu1 %v563_v31, %s2732_s21  ;;  %v2259_v34 = vmul.f32 -1.442695, %v554_v33 }
 0xaa3   :  { %2625 = vpow2.f32 %v2259_v34 }
 0xab0   :  { %v2626_v35 = vpop.eup %2625 }
 0xab1   :  { %v558_v36 = vadd.f32 1.0, %v2626_v35 }
 0xab3   :  { %2627 = vrcp.f32 %v558_v36 }
 0xac0   :  { %v2628_v37 = vpop.eup %2627 }
 0xb13   :  { %v565_v38 = vpop.permute.xlu1 %564 }
 0xb14   :  { %v567_v39 = vmul.f32 %v2628_v37, %v565_v38 }
 0xb16   :  { %569 = vrot.lane.b32.xlu0 %v567_v39, %s2732_s21 }
 0xb88   :  { %v570_v40 = vpop.permute.xlu0 %569 }
 0xb89   :  { %v572_v41 = vadd.f32 %v570_v40, %v2858_v17 }
 0xb8b   :  { %2629 = vtanh.f32 %v572_v41 }
 0xb98   :  { %v2630_v42 = vpop.eup %2629 }
 0xb99   :  { %v575_v43 = vrot.slane %v2630_v42, 2 }
 0xb9b   :  { %v577_v44 = vsub.f32 %v2909_v25, %v575_v43 }
 0xb9d   :  { %v579_v45 = vrot.slane %v577_v44, 6 }
 0xb9f   :  { %580 = vrot.lane.b32.xlu1 %v579_v45, %s2731_s20 }
 0xc11   :  { %v581_v46 = vpop.permute.xlu1 %580 }
 0xc12   :  { %v583_v47 = vmul.f32 %v2628_v37, %v581_v46 }
 0xc14   :  { %585 = vrot.lane.b32.xlu0 %v583_v47, %s2733_s22 }
 0xc86   :  { %v586_v48 = vpop.permute.xlu0 %585 }
 0xc87   :  { %v2932_v49 = vadd.f32 %v2630_v42, %v586_v48 }
 0xc89   :  { %v595_v50 = vrot.slane %v2932_v49, 6 }
 0xc8b   :  { %596 = vrot.lane.b32.xlu1 %v595_v50, %s2732_s21 }
 0xcfd   :  { %v597_v17 = vpop.permute.xlu1 %596 }
 0xcfe   :  { %2455 = vmatmul.mubr.msk.f32.vlgmr.msra.gmra.mxu1 %vm124_vm2, %v597_v17 }
 0xcff   :  { %2469 = vmatpush3.msra.mxu1 %v2782_v1  ;;  %2476 = vmatprep.mubr.msk.f32.mxu1 %vm2730_vm1, %v2729_v3 }
 0xd00   :  { %2470 = vmatprep.subr.mxu1 %v2729_v3 }
 0xd01   :  { %2471 = vmatpush3.msra.mxu1 %v2795_v5 }
 0xd02   :  { %2472 = vmatprep.subr.mxu1 %v2729_v3 }
 0xd03   :  { %2473 = vmatpush3.msra.mxu1 %v2804_v7 }
 0xd04   :  { %2474 = vmatprep.subr.mxu1 %v2729_v3 }
 0xd05   :  { %2475 = vmatpush3.msra.mxu1 %v2816_v9 }
 0xdbe   :  { %v666_v51 = vpop.f32.mrf.mxu1 }
 0xdbf   :  { %v677_v52 = vadd.f32 %v666_v51, %v2851_v11  ;;  %v670_v55 = vadd.f32 %v666_v51, %v2950_v54 }
 0xdc0   :  { %v2456_v53 = vpop.f32.mrf.mxu1 }
 0xdc1   :  { %679 = vrot.lane.b32.xlu0 %v677_v52, %s2732_s21  ;;  %v2261_v57 = vmul.f32 -1.442695, %v670_v55 }
 0xdc3   :  { %2631 = vpow2.f32 %v2261_v57 }
 0xdd0   :  { %v2632_v58 = vpop.eup %2631 }
 0xdd1   :  { %v674_v59 = vadd.f32 1.0, %v2632_v58 }
 0xdd3   :  { %2633 = vrcp.f32 %v674_v59 }
 0xde0   :  { %v2634_v60 = vpop.eup %2633 }
 0xe33   :  { %v680_v61 = vpop.permute.xlu0 %679 }
 0xe34   :  { %v682_v62 = vmul.f32 %v2634_v60, %v680_v61 }
 0xe36   :  { %684 = vrot.lane.b32.xlu1 %v682_v62, %s2732_s21 }
 0xea8   :  { %v685_v63 = vpop.permute.xlu1 %684 }
 0xea9   :  { %v687_v0 = vadd.f32 %v685_v63, %v2950_v54 }
 0xeab   :  { %2635 = vtanh.f32 %v687_v0 }
 0xeb8   :  { %v2636_v2 = vpop.eup %2635 }
 0xeb9   :  { %v690_v4 = vrot.slane %v2636_v2, 2 }
 0xebb   :  { %v692_v8 = vsub.f32 %v2932_v49, %v690_v4 }
 0xebd   :  { %v694_v15 = vrot.slane %v692_v8, 6 }
 0xebf   :  { %695 = vrot.lane.b32.xlu0 %v694_v15, %s2731_s20 }
 0xf31   :  { %v696_v6 = vpop.permute.xlu0 %695 }
 0xf32   :  { %v698_v10 = vmul.f32 %v2634_v60, %v696_v6 }
 0xf34   :  { %700 = vrot.lane.b32.xlu1 %v698_v10, %s2733_s22 }
 0xfa6   :  { %v701_v12 = vpop.permute.xlu1 %700 }
 0xfa7   :  { %v703_v13 = vadd.f32 %v2636_v2, %v701_v12 }
 0xfa9   :  { %705 = vrot.lane.b32.xlu0 %v703_v13, %s2732_s21 }
0x101b   :  { %v706_v14 = vpop.permute.xlu0 %705 }
0x101c   :  { %708 = vst.msk [vmem:[#allocation2 + $0x8] sm:$0x3] %vm239_vm3, %v706_v14  ;;  %2466 = vmatmul.mubr.msk.f32.vlgmr.msra.gmra.mxu0 %vm124_vm2, %v706_v14 }
0x101d   :  { %2480 = vmatpush3.msra.mxu0 %v2782_v1  ;;  %2487 = vmatprep.mubr.msk.f32.mxu0 %vm2730_vm1, %v2729_v3 }
0x101e   :  { %2481 = vmatprep.subr.mxu0 %v2729_v3 }
0x101f   :  { %2482 = vmatpush3.msra.mxu0 %v2795_v5 }
0x1020   :  { %2483 = vmatprep.subr.mxu0 %v2729_v3 }
0x1021   :  { %2484 = vmatpush3.msra.mxu0 %v2804_v7 }
0x1022   :  { %2485 = vmatprep.subr.mxu0 %v2729_v3 }
0x1023   :  { %2486 = vmatpush3.msra.mxu0 %v2816_v9 }
0x1024   :  { %2501 = vmatprep.subr.mxu0 %v2729_v3 }
0x10dc   :  { %v777_v16 = vpop.f32.mrf.mxu0 }
0x10dd   :  { %v791_v1 = vadd.f32 %v777_v16, %v2851_v11  ;;  %v782_v20 = vrot.slane %v777_v16, 6 }
0x10de   :  { %v2467_v18 = vpop.f32.mrf.mxu0 }
0x10df   :  { %v793_v19 = vrot.slane %v791_v1, 6  ;;  %v784_v5 = vadd.f32 %v782_v20, %v2950_v54 }
0x10e1   :  { %794 = vrot.lane.b32.xlu1 %v793_v19, %s2732_s21  ;;  %v2263_v21 = vmul.f32 -1.442695, %v784_v5 }
0x10e3   :  { %2637 = vpow2.f32 %v2263_v21 }
0x10f0   :  { %v2638_v22 = vpop.eup %2637 }
0x10f1   :  { %v788_v7 = vadd.f32 1.0, %v2638_v22 }
0x10f3   :  { %2639 = vrcp.f32 %v788_v7 }
0x1100   :  { %v2640_v23 = vpop.eup %2639 }
0x1153   :  { %v795_v24 = vpop.permute.xlu1 %794 }
0x1154   :  { %v797_v9 = vmul.f32 %v2640_v23, %v795_v24  ;;  %v3030_v24 = vld [vmem:[%s3298_s2 + $0x60] sm:$0xff] }
0x1156   :  { %799 = vrot.lane.b32.xlu0 %v797_v9, %s2732_s21  ;;  %v3038_v9 = vld [vmem:[%s3297_s1 + $0x2] sm:$0x3] }
0x11c8   :  { %v800_v26 = vpop.permute.xlu0 %799 }
0x11c9   :  { %v802_v27 = vadd.f32 %v800_v26, %v2950_v54 }
0x11cb   :  { %2641 = vtanh.f32 %v802_v27  ;;  %v2271_v27 = vld [vmem:[%s3298_s2 + $0x58] sm:$0xff] }
0x11cc   :  { %2490 = vmatprep.subr.mxu1 %v2271_v27 }
0x11d8   :  { %v2642_v28 = vpop.eup %2641 }
0x11d9   :  { %v805_v29 = vrot.slane %v2642_v28, 2 }
0x11db   :  { %v807_v30 = vsub.f32 %v703_v13, %v805_v29  ;;  %v2269_v29 = vld [vmem:[%s3298_s2 + $0x48] sm:$0xff] }
0x11dd   :  { %v809_v31 = vrot.slane %v807_v30, 6  ;;  %v3071_v30 = vld [vmem:[%s3299_s3 + $0x1] ss:$0 sm:$0xff] }
0x11df   :  { %810 = vrot.lane.b32.xlu1 %v809_v31, %s2731_s20  ;;  %v2268_v31 = vld [vmem:[%s3298_s2 + $0x40] sm:$0xff] }
0x1251   :  { %v811_v32 = vpop.permute.xlu1 %810 }
0x1252   :  { %v813_v33 = vmul.f32 %v2640_v23, %v811_v32  ;;  %v3014_v23 = vld [vmem:[%s3298_s2 + $0x70] sm:$0xff] }
0x1254   :  { %815 = vrot.lane.b32.xlu0 %v813_v33, %s2733_s22 }
0x12c6   :  { %v816_v34 = vpop.permute.xlu0 %815 }
0x12c7   :  { %v2978_v35 = vadd.f32 %v2642_v28, %v816_v34  ;;  %v2270_v28 = vld [vmem:[%s3298_s2 + $0x50] sm:$0xff] }
0x12c9   :  { %v824_v36 = vrot.slane %v2978_v35, 2 }
0x12cb   :  { %825 = vrot.lane.b32.xlu1 %v824_v36, %s2732_s21 }
0x133d   :  { %v826_v37 = vpop.permute.xlu1 %825 }
0x133e   :  { %2477 = vmatmul.mubr.msk.f32.vlgmr.msra.gmra.mxu1 %vm124_vm2, %v826_v37 }
0x133f   :  { %2491 = vmatpush3.msra.mxu1 %v2271_v27 }
0x1340   :  { %2492 = vmatprep.subr.mxu1 %v2270_v28 }
0x1341   :  { %2493 = vmatpush3.msra.mxu1 %v2270_v28 }
0x1342   :  { %2494 = vmatprep.subr.mxu1 %v2269_v29 }
0x1343   :  { %2495 = vmatpush3.msra.mxu1 %v2269_v29 }
0x1344   :  { %2496 = vmatprep.subr.mxu1 %v2268_v31 }
0x1345   :  { %2497 = vmatpush3.msra.mxu1 %v2268_v31 }
0x1346   :  { %2512 = vmatprep.subr.mxu1 %v2729_v3 }
0x13fe   :  { %v895_v38 = vpop.f32.mrf.mxu1 }
0x13ff   :  { %v909_v39 = vadd.f32 %v895_v38, %v2851_v11  ;;  %v900_v42 = vrot.slane %v895_v38, 4 }
0x1400   :  { %v2478_v40 = vpop.f32.mrf.mxu1 }
0x1401   :  { %v911_v41 = vrot.slane %v909_v39, 4  ;;  %v902_v43 = vadd.f32 %v900_v42, %v2950_v54 }
0x1403   :  { %912 = vrot.lane.b32.xlu0 %v911_v41, %s2732_s21  ;;  %v2265_v44 = vmul.f32 -1.442695, %v902_v43 }
0x1405   :  { %2643 = vpow2.f32 %v2265_v44 }
0x1412   :  { %v2644_v45 = vpop.eup %2643 }
0x1413   :  { %v906_v46 = vadd.f32 1.0, %v2644_v45 }
0x1415   :  { %2645 = vrcp.f32 %v906_v46 }
0x1422   :  { %v2646_v47 = vpop.eup %2645 }
0x1475   :  { %v913_v48 = vpop.permute.xlu0 %912 }
0x1476   :  { %v915_v50 = vmul.f32 %v2646_v47, %v913_v48 }
0x1478   :  { %917 = vrot.lane.b32.xlu1 %v915_v50, %s2732_s21 }
0x14ea   :  { %v918_v17 = vpop.permute.xlu1 %917 }
0x14eb   :  { %v920_v51 = vadd.f32 %v918_v17, %v2950_v54 }
0x14ed   :  { %2647 = vtanh.f32 %v920_v51 }
0x14fa   :  { %v2648_v52 = vpop.eup %2647 }
0x14fb   :  { %v923_v53 = vrot.slane %v2648_v52, 2 }
0x14fd   :  { %v925_v55 = vsub.f32 %v2978_v35, %v923_v53 }
0x14ff   :  { %v927_v57 = vrot.slane %v925_v55, 6 }
0x1501   :  { %928 = vrot.lane.b32.xlu0 %v927_v57, %s2731_s20 }
0x1573   :  { %v929_v58 = vpop.permute.xlu0 %928 }
0x1574   :  { %v931_v59 = vmul.f32 %v2646_v47, %v929_v58 }
0x1576   :  { %933 = vrot.lane.b32.xlu1 %v931_v59, %s2733_s22 }
0x15e8   :  { %v934_v60 = vpop.permute.xlu1 %933 }
0x15e9   :  { %v936_v61 = vadd.f32 %v2648_v52, %v934_v60 }
0x15eb   :  { %v942_v62 = vrot.slane %v936_v61, 4 }
0x15ed   :  { %943 = vrot.lane.b32.xlu0 %v942_v62, %s2732_s21 }
0x165f   :  { %v944_v63 = vpop.permute.xlu0 %943 }
0x1660   :  { %2488 = vmatmul.mubr.msk.f32.vlgmr.msra.gmra.mxu0 %vm124_vm2, %v944_v63 }
0x1661   :  { %2509 = vmatprep.mubr.msk.f32.mxu0 %vm2730_vm1, %v2729_v3 }
0x1720   :  { %v1013_v0 = vpop.f32.mrf.mxu0 }
0x1721   :  { %v1027_v2 = vadd.f32 %v1013_v0, %v2851_v11  ;;  %v1018_v15 = vrot.slane %v1013_v0, 2 }
0x1722   :  { %v2489_v4 = vpop.f32.mrf.mxu0 }
0x1723   :  { %v1029_v8 = vrot.slane %v1027_v2, 2  ;;  %v1020_v6 = vadd.f32 %v1018_v15, %v2950_v54 }
0x1725   :  { %1030 = vrot.lane.b32.xlu1 %v1029_v8, %s2732_s21  ;;  %v2267_v10 = vmul.f32 -1.442695, %v1020_v6 }
0x1727   :  { %2649 = vpow2.f32 %v2267_v10 }
0x1734   :  { %v2650_v12 = vpop.eup %2649 }
0x1735   :  { %v1024_v13 = vadd.f32 1.0, %v2650_v12 }
0x1737   :  { %2651 = vrcp.f32 %v1024_v13 }
0x1744   :  { %v2652_v14 = vpop.eup %2651 }
0x1797   :  { %v1031_v16 = vpop.permute.xlu1 %1030 }
0x1798   :  { %v1033_v1 = vmul.f32 %v2652_v14, %v1031_v16 }
0x179a   :  { %1035 = vrot.lane.b32.xlu0 %v1033_v1, %s2732_s21 }
0x180c   :  { %v1036_v18 = vpop.permute.xlu0 %1035 }
0x180d   :  { %v1038_v11 = vadd.f32 %v1036_v18, %v2950_v54  ;;  %v3009_v54 = vld [vmem:[%s3298_s2 + $0x78] sm:$0xff] }
0x180e   :  { %2502 = vmatpush3.msra.mxu0 %v3009_v54 }
0x180f   :  { %2653 = vtanh.f32 %v1038_v11  ;;  %2503 = vmatprep.subr.mxu0 %v2729_v3 }
0x1810   :  { %2504 = vmatpush3.msra.mxu0 %v3014_v23 }
0x1811   :  { %2505 = vmatprep.subr.mxu0 %v2729_v3 }
0x181c   :  { %v2654_v19 = vpop.eup %2653 }
0x181d   :  { %v1041_v20 = vrot.slane %v2654_v19, 2 }
0x181f   :  { %v1043_v5 = vsub.f32 %v936_v61, %v1041_v20 }
0x1821   :  { %v1045_v21 = vrot.slane %v1043_v5, 6 }
0x1823   :  { %1046 = vrot.lane.b32.xlu1 %v1045_v21, %s2731_s20 }
0x1827   :  { %352 = vrot.lane.b32.xlu1 %v2886_v56, %s2732_s21 }
0x182b   :  { %590 = vrot.lane.b32.xlu1 %v2932_v49, %s2732_s21  ;;  %v3022_v49 = vld [vmem:[%s3298_s2 + $0x68] sm:$0xff] }
0x182c   :  { %2506 = vmatpush3.msra.mxu0 %v3022_v49 }
0x182d   :  { %2507 = vmatprep.subr.mxu0 %v2729_v3 }
0x182e   :  { %2508 = vmatpush3.msra.mxu0 %v3030_v24 }
0x182f   :  { %938 = vrot.lane.b32.xlu1 %v936_v61, %s2732_s21  ;;  %2510 = vmatmul.mubr.msk.f32.vlgmr.msra.gmra.mxu0 %vm124_vm2, %v3038_v9 }
0x1830   :  { %2523 = vmatprep.subr.mxu0 %v2729_v3  ;;  %2531 = vmatprep.mubr.msk.f32.mxu0 %vm2730_vm1, %v2729_v3 }
0x1831   :  { %2524 = vmatpush3.msra.mxu0 %v3009_v54 }
0x1832   :  { %2525 = vmatprep.subr.mxu0 %v2729_v3 }
0x1833   :  { %2526 = vmatpush3.msra.mxu0 %v3014_v23  ;;  %1243 = vrot.lane.b32.xlu1 %v3071_v30, %s2731_s20 }
0x1834   :  { %2527 = vmatprep.subr.mxu0 %v2729_v3 }
0x1835   :  { %2528 = vmatpush3.msra.mxu0 %v3022_v49 }
0x1836   :  { %2529 = vmatprep.subr.mxu0 %v2729_v3 }
0x1837   :  { %2530 = vmatpush3.msra.mxu0 %v3030_v24 }
0x1838   :  { %2545 = vmatprep.subr.mxu0 %v2729_v3 }
0x1895   :  { %v1047_v22 = vpop.permute.xlu1 %1046 }
0x1896   :  { %v1049_v7 = vmul.f32 %v2652_v14, %v1047_v22 }
0x1898   :  { %1051 = vrot.lane.b32.xlu0 %v1049_v7, %s2733_s22 }
0x1899   :  { %v353_v56 = vpop.permute.xlu1 %352 }
0x189a   :  { %356 = vst.msk [vmem:[#allocation2] sm:$0xc] %vm355_vm4, %v353_v56 }
0x189c   :  { %471 = vrot.lane.b32.xlu0 %v2909_v25, %s2732_s21 }
0x189d   :  { %v591_v26 = vpop.permute.xlu1 %590 }
0x189e   :  { %594 = vst.msk [vmem:[#allocation2] sm:$0xc0] %vm593_vm5, %v591_v26 }
0x18a0   :  { %820 = vrot.lane.b32.xlu0 %v2978_v35, %s2732_s21 }
0x18a1   :  { %v939_v25 = vpop.permute.xlu1 %938 }
0x18a2   :  { %941 = vst.msk [vmem:[#allocation2 + $0x8] sm:$0x30] %vm474_vm6, %v939_v25 }
0x18a5   :  { %v3083_v39 = vpop.permute.xlu1 %1243 }
0x18ef   :  { %v1232_v37 = vpop.f32.mrf.mxu0 }
0x18f0   :  { %v1246_v40 = vadd.f32 %v3083_v39, %v1232_v37 }
0x18f1   :  { %v2511_v38 = vpop.f32.mrf.mxu0 }
0x190a   :  { %v1052_v32 = vpop.permute.xlu0 %1051 }
0x190b   :  { %v1054_v33 = vadd.f32 %v2654_v19, %v1052_v32 }
0x190d   :  { %1056 = vrot.lane.b32.xlu0 %v1054_v33, %s2732_s21 }
0x190e   :  { %v472_v34 = vpop.permute.xlu0 %471 }
0x190f   :  { %475 = vst.msk [vmem:[#allocation2] sm:$0x30] %vm474_vm6, %v472_v34 }
0x1911   :  { %1248 = vrot.lane.b32.xlu0 %v1246_v40, %s2732_s21 }
0x1912   :  { %v821_v35 = vpop.permute.xlu0 %820 }
0x1913   :  { %823 = vst.msk [vmem:[#allocation2 + $0x8] sm:$0xc] %vm355_vm4, %v821_v35 }
0x1916   :  { %v1072_v36 = vld [vmem:[#allocation2] sm:$0xff] }
0x1917   :  { %2498 = vmatprep.mubr.msk.f32.mxu1 %vm124_vm2, %v1072_v36 }
0x197f   :  { %v1057_v41 = vpop.permute.xlu0 %1056 }
0x1980   :  { %1059 = vst.msk [vmem:[#allocation2 + $0x8] sm:$0xc0] %vm593_vm5, %v1057_v41  ;;  %1060 = vst.msk [vmem:[#allocation3 - $0x6] sm:$0xc0] %vm593_vm5, %v1057_v41 }
0x1983   :  { %v1249_v17 = vpop.permute.xlu0 %1248 }
0x1987   :  { %v1073_v42 = vld [vmem:[#allocation2 + $0x8] sm:$0xff] }
0x1988   :  { %2499 = vmatmul.mubr.msk.f32.vlgmr.msra.gmra.mxu1 %vm124_vm2, %v1073_v42 }
0x1989   :  { %2513 = vmatpush3.msra.mxu1 %v3009_v54  ;;  %2520 = vmatprep.mubr.msk.f32.mxu1 %vm2730_vm1, %v2729_v3 }
0x198a   :  { %2514 = vmatprep.subr.mxu1 %v2729_v3 }
0x198b   :  { %2515 = vmatpush3.msra.mxu1 %v3014_v23 }
0x198c   :  { %2516 = vmatprep.subr.mxu1 %v2729_v3 }
0x198d   :  { %2517 = vmatpush3.msra.mxu1 %v3022_v49 }
0x198e   :  { %2518 = vmatprep.subr.mxu1 %v2729_v3 }
0x198f   :  { %2519 = vmatpush3.msra.mxu1 %v3030_v24 }
0x1990   :  { %2534 = vmatprep.subr.mxu1 %v2729_v3 }
0x1a48   :  { %v3100_v43 = vpop.f32.mrf.mxu1 }
0x1a4a   :  { %v1152_v44 = vpop.f32.mrf.mxu1 }
0x1a4b   :  { %v3103_v45 = vadd.f32 %v3071_v30, %v1152_v44 }
0x1a4d   :  { %v1236_v46 = vadd.f32 %v1232_v37, %v3103_v45 }
0x1a4f   :  { %v2282_v47 = vmul.f32 -1.442695, %v1236_v46 }
0x1a51   :  { %2655 = vpow2.f32 %v2282_v47 }
0x1a5e   :  { %v2656_v48 = vpop.eup %2655 }
0x1a5f   :  { %v1240_v50 = vadd.f32 1.0, %v2656_v48 }
0x1a61   :  { %2657 = vrcp.f32 %v1240_v50 }
0x1a6e   :  { %v2658_v51 = vpop.eup %2657 }
0x1a6f   :  { %v1251_v52 = vmul.f32 %v2658_v51, %v1249_v17 }
0x1a71   :  { %1253 = vrot.lane.b32.xlu1 %v1251_v52, %s2732_s21 }
0x1ae3   :  { %v1254_v53 = vpop.permute.xlu1 %1253 }
0x1ae4   :  { %v1256_v55 = vadd.f32 %v1254_v53, %v3103_v45 }
0x1ae6   :  { %2659 = vtanh.f32 %v1256_v55 }
0x1af3   :  { %v2660_v57 = vpop.eup %2659 }
0x1af4   :  { %1259 = vrot.lane.b32.xlu0 %v2660_v57, %s2732_s21 }
0x1b66   :  { %v1260_v58 = vpop.permute.xlu0 %1259 }
0x1b67   :  { %v1262_v59 = vsub.f32 %v3038_v9, %v1260_v58 }
0x1b69   :  { %1264 = vrot.lane.b32.xlu1 %v1262_v59, %s2733_s22 }
0x1bdb   :  { %v1265_v60 = vpop.permute.xlu1 %1264 }
0x1bdc   :  { %v1267_v61 = vmul.f32 %v2658_v51, %v1265_v60 }
0x1bde   :  { %1269 = vrot.lane.b32.xlu0 %v1267_v61, %s2733_s22 }
0x1c50   :  { %v1270_v62 = vpop.permute.xlu0 %1269 }
0x1c51   :  { %v1272_v63 = vadd.f32 %v2660_v57, %v1270_v62 }
0x1c53   :  { %1274 = vrot.lane.b32.xlu1 %v1272_v63, %s2732_s21 }
0x1cc5   :  { %v1275_v0 = vpop.permute.xlu1 %1274 }
0x1cc6   :  { %1277 = vst.msk [vmem:[#allocation2] sm:$0x3] %vm239_vm3, %v1275_v0  ;;  %2521 = vmatmul.mubr.msk.f32.vlgmr.msra.gmra.mxu1 %vm124_vm2, %v1275_v0 }
0x1cc7   :  { %2535 = vmatpush3.msra.mxu1 %v3009_v54  ;;  %2542 = vmatprep.mubr.msk.f32.mxu1 %vm2730_vm1, %v2729_v3 }
0x1cc8   :  { %2536 = vmatprep.subr.mxu1 %v2729_v3 }
0x1cc9   :  { %2537 = vmatpush3.msra.mxu1 %v3014_v23 }
0x1cca   :  { %2538 = vmatprep.subr.mxu1 %v2729_v3 }
0x1ccb   :  { %2539 = vmatpush3.msra.mxu1 %v3022_v49 }
0x1ccc   :  { %2540 = vmatprep.subr.mxu1 %v2729_v3 }
0x1ccd   :  { %2541 = vmatpush3.msra.mxu1 %v3030_v24 }
0x1cce   :  { %2556 = vmatprep.subr.mxu1 %v2729_v3 }
0x1d86   :  { %v1346_v2 = vpop.f32.mrf.mxu1 }
0x1d87   :  { %v1360_v4 = vadd.f32 %v1346_v2, %v3083_v39  ;;  %v1351_v6 = vrot.slane %v1346_v2, 6 }
0x1d88   :  { %v2522_v8 = vpop.f32.mrf.mxu1 }
0x1d89   :  { %v1362_v15 = vrot.slane %v1360_v4, 6  ;;  %v1353_v10 = vadd.f32 %v1351_v6, %v3103_v45 }
0x1d8b   :  { %1363 = vrot.lane.b32.xlu0 %v1362_v15, %s2732_s21  ;;  %v2284_v12 = vmul.f32 -1.442695, %v1353_v10 }
0x1d8d   :  { %2661 = vpow2.f32 %v2284_v12 }
0x1d9a   :  { %v2662_v13 = vpop.eup %2661 }
0x1d9b   :  { %v1357_v14 = vadd.f32 1.0, %v2662_v13 }
0x1d9d   :  { %2663 = vrcp.f32 %v1357_v14 }
0x1daa   :  { %v2664_v16 = vpop.eup %2663 }
0x1dfd   :  { %v1364_v1 = vpop.permute.xlu0 %1363 }
0x1dfe   :  { %v1366_v18 = vmul.f32 %v2664_v16, %v1364_v1 }
0x1e00   :  { %1368 = vrot.lane.b32.xlu1 %v1366_v18, %s2732_s21 }
0x1e72   :  { %v1369_v11 = vpop.permute.xlu1 %1368 }
0x1e73   :  { %v1371_v19 = vadd.f32 %v1369_v11, %v3103_v45 }
0x1e75   :  { %2665 = vtanh.f32 %v1371_v19 }
0x1e82   :  { %v2666_v20 = vpop.eup %2665 }
0x1e83   :  { %v1374_v5 = vrot.slane %v2666_v20, 2 }
0x1e85   :  { %v1376_v21 = vsub.f32 %v1272_v63, %v1374_v5 }
0x1e87   :  { %v1378_v22 = vrot.slane %v1376_v21, 6 }
0x1e89   :  { %1379 = vrot.lane.b32.xlu0 %v1378_v22, %s2731_s20 }
0x1efb   :  { %v1380_v7 = vpop.permute.xlu0 %1379 }
0x1efc   :  { %v1382_v56 = vmul.f32 %v2664_v16, %v1380_v7 }
0x1efe   :  { %1384 = vrot.lane.b32.xlu1 %v1382_v56, %s2733_s22  ;;  %v3196_v56 = vadd.f32 %v3100_v43, %v3071_v30 }
0x1f70   :  { %v1385_v9 = vpop.permute.xlu1 %1384 }
0x1f71   :  { %v3132_v26 = vadd.f32 %v2666_v20, %v1385_v9 }
0x1f73   :  { %v1393_v25 = vrot.slane %v3132_v26, 2 }
0x1f75   :  { %1394 = vrot.lane.b32.xlu0 %v1393_v25, %s2732_s21 }
0x1fe7   :  { %v1395_v27 = vpop.permute.xlu0 %1394 }
0x1fe8   :  { %2532 = vmatmul.mubr.msk.f32.vlgmr.msra.gmra.mxu0 %vm124_vm2, %v1395_v27 }
0x1fe9   :  { %2546 = vmatpush3.msra.mxu0 %v3009_v54  ;;  %2553 = vmatprep.mubr.msk.f32.mxu0 %vm2730_vm1, %v2729_v3 }
0x1fea   :  { %2547 = vmatprep.subr.mxu0 %v2729_v3 }
0x1feb   :  { %2548 = vmatpush3.msra.mxu0 %v3014_v23 }
0x1fec   :  { %2549 = vmatprep.subr.mxu0 %v2729_v3 }
0x1fed   :  { %2550 = vmatpush3.msra.mxu0 %v3022_v49 }
0x1fee   :  { %2551 = vmatprep.subr.mxu0 %v2729_v3 }
0x1fef   :  { %2552 = vmatpush3.msra.mxu0 %v3030_v24 }
0x1ff0   :  { %2567 = vmatprep.subr.mxu0 %v2729_v3 }
0x20a8   :  { %v1464_v28 = vpop.f32.mrf.mxu0 }
0x20a9   :  { %v1478_v29 = vadd.f32 %v1464_v28, %v3083_v39  ;;  %v1469_v33 = vrot.slane %v1464_v28, 4 }
0x20aa   :  { %v2533_v31 = vpop.f32.mrf.mxu0 }
0x20ab   :  { %v1480_v32 = vrot.slane %v1478_v29, 4  ;;  %v1471_v34 = vadd.f32 %v1469_v33, %v3103_v45 }
0x20ad   :  { %1481 = vrot.lane.b32.xlu1 %v1480_v32, %s2732_s21  ;;  %v2286_v35 = vmul.f32 -1.442695, %v1471_v34 }
0x20af   :  { %2667 = vpow2.f32 %v2286_v35 }
0x20bc   :  { %v2668_v36 = vpop.eup %2667 }
0x20bd   :  { %v1475_v37 = vadd.f32 1.0, %v2668_v36 }
0x20bf   :  { %2669 = vrcp.f32 %v1475_v37 }
0x20cc   :  { %v2670_v38 = vpop.eup %2669 }
0x211f   :  { %v1482_v40 = vpop.permute.xlu1 %1481 }
0x2120   :  { %v1484_v41 = vmul.f32 %v2670_v38, %v1482_v40 }
0x2122   :  { %1486 = vrot.lane.b32.xlu0 %v1484_v41, %s2732_s21 }
0x2194   :  { %v1487_v42 = vpop.permute.xlu0 %1486 }
0x2195   :  { %v1489_v44 = vadd.f32 %v1487_v42, %v3103_v45 }
0x2197   :  { %2671 = vtanh.f32 %v1489_v44 }
0x21a4   :  { %v2672_v46 = vpop.eup %2671 }
0x21a5   :  { %v1492_v47 = vrot.slane %v2672_v46, 2 }
0x21a7   :  { %v1494_v48 = vsub.f32 %v3132_v26, %v1492_v47 }
0x21a9   :  { %v1496_v50 = vrot.slane %v1494_v48, 6 }
0x21ab   :  { %1497 = vrot.lane.b32.xlu1 %v1496_v50, %s2731_s20 }
0x221d   :  { %v1498_v17 = vpop.permute.xlu1 %1497 }
0x221e   :  { %v1500_v51 = vmul.f32 %v2670_v38, %v1498_v17 }
0x2220   :  { %1502 = vrot.lane.b32.xlu0 %v1500_v51, %s2733_s22 }
0x2292   :  { %v1503_v52 = vpop.permute.xlu0 %1502 }
0x2293   :  { %v3155_v53 = vadd.f32 %v2672_v46, %v1503_v52 }
0x2295   :  { %v1511_v55 = vrot.slane %v3155_v53, 4 }
0x2297   :  { %1512 = vrot.lane.b32.xlu1 %v1511_v55, %s2732_s21 }
0x2309   :  { %v1513_v57 = vpop.permute.xlu1 %1512 }
0x230a   :  { %2543 = vmatmul.mubr.msk.f32.vlgmr.msra.gmra.mxu1 %vm124_vm2, %v1513_v57 }
0x230b   :  { %2557 = vmatpush3.msra.mxu1 %v3009_v54  ;;  %2564 = vmatprep.mubr.msk.f32.mxu1 %vm2730_vm1, %v2729_v3 }
0x230c   :  { %2558 = vmatprep.subr.mxu1 %v2729_v3 }
0x230d   :  { %2559 = vmatpush3.msra.mxu1 %v3014_v23 }
0x230e   :  { %2560 = vmatprep.subr.mxu1 %v2729_v3 }
0x230f   :  { %2561 = vmatpush3.msra.mxu1 %v3022_v49 }
0x2310   :  { %2562 = vmatprep.subr.mxu1 %v2729_v3 }
0x2311   :  { %2563 = vmatpush3.msra.mxu1 %v3030_v24 }
0x2312   :  { %2578 = vmatprep.subr.mxu1 %v2729_v3 }
0x23ca   :  { %v1582_v58 = vpop.f32.mrf.mxu1 }
0x23cb   :  { %v1596_v59 = vadd.f32 %v1582_v58, %v3083_v39  ;;  %v1587_v62 = vrot.slane %v1582_v58, 2 }
0x23cc   :  { %v2544_v60 = vpop.f32.mrf.mxu1 }
0x23cd   :  { %v1598_v61 = vrot.slane %v1596_v59, 2  ;;  %v1589_v63 = vadd.f32 %v1587_v62, %v3103_v45 }
0x23cf   :  { %1599 = vrot.lane.b32.xlu0 %v1598_v61, %s2732_s21  ;;  %v2288_v0 = vmul.f32 -1.442695, %v1589_v63 }
0x23d1   :  { %2673 = vpow2.f32 %v2288_v0 }
0x23de   :  { %v2674_v2 = vpop.eup %2673 }
0x23df   :  { %v1593_v4 = vadd.f32 1.0, %v2674_v2 }
0x23e1   :  { %2675 = vrcp.f32 %v1593_v4 }
0x23ee   :  { %v2676_v8 = vpop.eup %2675 }
0x2441   :  { %v1600_v15 = vpop.permute.xlu0 %1599 }
0x2442   :  { %v1602_v6 = vmul.f32 %v2676_v8, %v1600_v15 }
0x2444   :  { %1604 = vrot.lane.b32.xlu1 %v1602_v6, %s2732_s21 }
0x24b6   :  { %v1605_v10 = vpop.permute.xlu1 %1604 }
0x24b7   :  { %v1607_v12 = vadd.f32 %v1605_v10, %v3103_v45 }
0x24b9   :  { %2677 = vtanh.f32 %v1607_v12 }
0x24c6   :  { %v2678_v13 = vpop.eup %2677 }
0x24c7   :  { %v1610_v14 = vrot.slane %v2678_v13, 2 }
0x24c9   :  { %v1612_v16 = vsub.f32 %v3155_v53, %v1610_v14 }
0x24cb   :  { %v1614_v1 = vrot.slane %v1612_v16, 6 }
0x24cd   :  { %1615 = vrot.lane.b32.xlu0 %v1614_v1, %s2731_s20 }
0x253f   :  { %v1616_v18 = vpop.permute.xlu0 %1615 }
0x2540   :  { %v1618_v11 = vmul.f32 %v2676_v8, %v1616_v18 }
0x2542   :  { %1620 = vrot.lane.b32.xlu1 %v1618_v11, %s2733_s22 }
0x25b4   :  { %v1621_v19 = vpop.permute.xlu1 %1620 }
0x25b5   :  { %v3178_v20 = vadd.f32 %v2678_v13, %v1621_v19 }
0x25b7   :  { %v1629_v5 = vrot.slane %v3178_v20, 6 }
0x25b9   :  { %1630 = vrot.lane.b32.xlu0 %v1629_v5, %s2732_s21 }
0x262b   :  { %v1631_v45 = vpop.permute.xlu0 %1630 }
0x262c   :  { %2554 = vmatmul.mubr.msk.f32.vlgmr.msra.gmra.mxu0 %vm124_vm2, %v1631_v45 }
0x262d   :  { %2568 = vmatpush3.msra.mxu0 %v3009_v54  ;;  %2575 = vmatprep.mubr.msk.f32.mxu0 %vm2730_vm1, %v2729_v3 }
0x262e   :  { %2569 = vmatprep.subr.mxu0 %v2729_v3 }
0x262f   :  { %2570 = vmatpush3.msra.mxu0 %v3014_v23 }
0x2630   :  { %2571 = vmatprep.subr.mxu0 %v2729_v3 }
0x2631   :  { %2572 = vmatpush3.msra.mxu0 %v3022_v49 }
0x2632   :  { %2573 = vmatprep.subr.mxu0 %v2729_v3 }
0x2633   :  { %2574 = vmatpush3.msra.mxu0 %v3030_v24 }
0x26ec   :  { %v1700_v21 = vpop.f32.mrf.mxu0 }
0x26ed   :  { %v1711_v22 = vadd.f32 %v1700_v21, %v3083_v39  ;;  %v1704_v9 = vadd.f32 %v1700_v21, %v3196_v56 }
0x26ee   :  { %v2555_v7 = vpop.f32.mrf.mxu0 }
0x26ef   :  { %1713 = vrot.lane.b32.xlu1 %v1711_v22, %s2732_s21  ;;  %v2290_v25 = vmul.f32 -1.442695, %v1704_v9 }
0x26f1   :  { %2679 = vpow2.f32 %v2290_v25 }
0x26fe   :  { %v2680_v27 = vpop.eup %2679 }
0x26ff   :  { %v1708_v28 = vadd.f32 1.0, %v2680_v27 }
0x2701   :  { %2681 = vrcp.f32 %v1708_v28 }
0x270e   :  { %v2682_v29 = vpop.eup %2681 }
0x2761   :  { %v1714_v31 = vpop.permute.xlu1 %1713 }
0x2762   :  { %v1716_v32 = vmul.f32 %v2682_v29, %v1714_v31 }
0x2764   :  { %1718 = vrot.lane.b32.xlu0 %v1716_v32, %s2732_s21 }
0x27d6   :  { %v1719_v33 = vpop.permute.xlu0 %1718 }
0x27d7   :  { %v1721_v34 = vadd.f32 %v1719_v33, %v3196_v56 }
0x27d9   :  { %2683 = vtanh.f32 %v1721_v34 }
0x27e6   :  { %v2684_v35 = vpop.eup %2683 }
0x27e7   :  { %v1724_v36 = vrot.slane %v2684_v35, 2 }
0x27e9   :  { %v1726_v30 = vsub.f32 %v3178_v20, %v1724_v36 }
0x27eb   :  { %v1728_v43 = vrot.slane %v1726_v30, 6 }
0x27ed   :  { %1729 = vrot.lane.b32.xlu1 %v1728_v43, %s2731_s20 }
0x285f   :  { %v1730_v37 = vpop.permute.xlu1 %1729 }
0x2860   :  { %v1732_v38 = vmul.f32 %v2682_v29, %v1730_v37 }
0x2862   :  { %1734 = vrot.lane.b32.xlu0 %v1732_v38, %s2733_s22 }
0x28d4   :  { %v1735_v40 = vpop.permute.xlu0 %1734 }
0x28d5   :  { %v1737_v41 = vadd.f32 %v2684_v35, %v1735_v40 }
0x28d7   :  { %1739 = vrot.lane.b32.xlu1 %v1737_v41, %s2732_s21 }
0x2949   :  { %v1740_v42 = vpop.permute.xlu1 %1739 }
0x294a   :  { %1742 = vst.msk [vmem:[#allocation2 + $0x8] sm:$0x3] %vm239_vm3, %v1740_v42  ;;  %2565 = vmatmul.mubr.msk.f32.vlgmr.msra.gmra.mxu1 %vm124_vm2, %v1740_v42 }
0x294b   :  { %2579 = vmatpush3.msra.mxu1 %v3009_v54  ;;  %2586 = vmatprep.mubr.msk.f32.mxu1 %vm2730_vm1, %v2729_v3 }
0x294c   :  { %2580 = vmatprep.subr.mxu1 %v2729_v3 }
0x294d   :  { %2581 = vmatpush3.msra.mxu1 %v3014_v23 }
0x294e   :  { %2582 = vmatprep.subr.mxu1 %v2729_v3 }
0x294f   :  { %2583 = vmatpush3.msra.mxu1 %v3022_v49 }
0x2950   :  { %2584 = vmatprep.subr.mxu1 %v2729_v3 }
0x2951   :  { %2585 = vmatpush3.msra.mxu1 %v3030_v24 }
0x2a0a   :  { %v1811_v44 = vpop.f32.mrf.mxu1 }
0x2a0b   :  { %v1825_v46 = vadd.f32 %v1811_v44, %v3083_v39  ;;  %v1816_v48 = vrot.slane %v1811_v44, 6 }
0x2a0c   :  { %v2566_v47 = vpop.f32.mrf.mxu1 }
0x2a0d   :  { %v1827_v54 = vrot.slane %v1825_v46, 6  ;;  %v1818_v50 = vadd.f32 %v1816_v48, %v3196_v56 }
0x2a0f   :  { %1828 = vrot.lane.b32.xlu0 %v1827_v54, %s2732_s21  ;;  %v2292_v17 = vmul.f32 -1.442695, %v1818_v50 }
0x2a11   :  { %2685 = vpow2.f32 %v2292_v17 }
0x2a1e   :  { %v2686_v23 = vpop.eup %2685 }
0x2a1f   :  { %v1822_v51 = vadd.f32 1.0, %v2686_v23 }
0x2a21   :  { %2687 = vrcp.f32 %v1822_v51 }
0x2a2e   :  { %v2688_v49 = vpop.eup %2687 }
0x2a81   :  { %v1829_v52 = vpop.permute.xlu0 %1828 }
0x2a82   :  { %v1831_v3 = vmul.f32 %v2688_v49, %v1829_v52  ;;  %v2099_v52 = vld [vmem:[%s3300_s4] sm:$0xff] }
0x2a84   :  { %1833 = vrot.lane.b32.xlu1 %v1831_v3, %s2732_s21 }
0x2af6   :  { %v1834_v24 = vpop.permute.xlu1 %1833 }
0x2af7   :  { %v1836_v55 = vadd.f32 %v1834_v24, %v3196_v56 }
0x2af9   :  { %2689 = vtanh.f32 %v1836_v55 }
0x2b06   :  { %v2690_v57 = vpop.eup %2689 }
0x2b07   :  { %v1839_v58 = vrot.slane %v2690_v57, 2 }
0x2b09   :  { %v1841_v59 = vsub.f32 %v1737_v41, %v1839_v58 }
0x2b0b   :  { %v1843_v60 = vrot.slane %v1841_v59, 6 }
0x2b0d   :  { %1844 = vrot.lane.b32.xlu0 %v1843_v60, %s2731_s20 }
0x2b7f   :  { %v1845_v61 = vpop.permute.xlu0 %1844 }
0x2b80   :  { %v1847_v62 = vmul.f32 %v2688_v49, %v1845_v61  ;;  %v2101_v49 = vld [vmem:[%s3300_s4 + $0x10] sm:$0xff]  ;;  %v2103_v61 = vlaneseq }
0x2b82   :  { %1849 = vrot.lane.b32.xlu1 %v1847_v62, %s2733_s22  ;;  %v2104_v62 = vshrl.u32 %v2103_v61, 7 }
0x2bf4   :  { %v1850_v63 = vpop.permute.xlu1 %1849 }
0x2bf5   :  { %v3223_v0 = vadd.f32 %v2690_v57, %v1850_v63  ;;  %v2105_v63 = vsub.s32 0, %v2104_v62 }
0x2bf7   :  { %v1858_v2 = vrot.slane %v3223_v0, 2 }
0x2bf9   :  { %1859 = vrot.lane.b32.xlu0 %v1858_v2, %s2732_s21 }
0x2c6b   :  { %v1860_v4 = vpop.permute.xlu0 %1859 }
0x2c6c   :  { %2576 = vmatmul.mubr.msk.f32.vlgmr.msra.gmra.mxu0 %vm124_vm2, %v1860_v4 }
0x2d2c   :  { %v1929_v8 = vpop.f32.mrf.mxu0 }
0x2d2d   :  { %v1943_v15 = vadd.f32 %v1929_v8, %v3083_v39  ;;  %v1934_v12 = vrot.slane %v1929_v8, 4 }
0x2d2e   :  { %v2577_v6 = vpop.f32.mrf.mxu0 }
0x2d2f   :  { %v1945_v10 = vrot.slane %v1943_v15, 4  ;;  %v1936_v13 = vadd.f32 %v1934_v12, %v3196_v56 }
0x2d31   :  { %1946 = vrot.lane.b32.xlu1 %v1945_v10, %s2732_s21  ;;  %v2294_v14 = vmul.f32 -1.442695, %v1936_v13 }
0x2d33   :  { %2691 = vpow2.f32 %v2294_v14 }
0x2d40   :  { %v2692_v16 = vpop.eup %2691 }
0x2d41   :  { %v1940_v1 = vadd.f32 1.0, %v2692_v16 }
0x2d43   :  { %2693 = vrcp.f32 %v1940_v1 }
0x2d50   :  { %v2694_v18 = vpop.eup %2693 }
0x2da3   :  { %v1947_v11 = vpop.permute.xlu1 %1946 }
0x2da4   :  { %v1949_v19 = vmul.f32 %v2694_v18, %v1947_v11 }
0x2da6   :  { %1951 = vrot.lane.b32.xlu0 %v1949_v19, %s2732_s21 }
0x2e18   :  { %v1952_v5 = vpop.permute.xlu0 %1951 }
0x2e19   :  { %v1954_v45 = vadd.f32 %v1952_v5, %v3196_v56 }
0x2e1b   :  { %2695 = vtanh.f32 %v1954_v45 }
0x2e28   :  { %v2696_v21 = vpop.eup %2695 }
0x2e29   :  { %v1957_v22 = vrot.slane %v2696_v21, 2 }
0x2e2b   :  { %v1959_v7 = vsub.f32 %v3223_v0, %v1957_v22 }
0x2e2d   :  { %v1961_v9 = vrot.slane %v1959_v7, 6 }
0x2e2f   :  { %1962 = vrot.lane.b32.xlu1 %v1961_v9, %s2731_s20 }
0x2ea1   :  { %v1963_v25 = vpop.permute.xlu1 %1962 }
0x2ea2   :  { %v1965_v27 = vmul.f32 %v2694_v18, %v1963_v25 }
0x2ea4   :  { %1967 = vrot.lane.b32.xlu0 %v1965_v27, %s2733_s22 }
0x2f16   :  { %v1968_v28 = vpop.permute.xlu0 %1967 }
0x2f17   :  { %v1970_v29 = vadd.f32 %v2696_v21, %v1968_v28 }
0x2f19   :  { %v1976_v31 = vrot.slane %v1970_v29, 4 }
0x2f1b   :  { %1977 = vrot.lane.b32.xlu1 %v1976_v31, %s2732_s21 }
0x2f8d   :  { %v1978_v32 = vpop.permute.xlu1 %1977 }
0x2f8e   :  { %2587 = vmatmul.mubr.msk.f32.vlgmr.msra.gmra.mxu1 %vm124_vm2, %v1978_v32 }
0x304e   :  { %v2047_v33 = vpop.f32.mrf.mxu1 }
0x304f   :  { %v2061_v34 = vadd.f32 %v2047_v33, %v3083_v39  ;;  %v2052_v30 = vrot.slane %v2047_v33, 2 }
0x3050   :  { %v2588_v35 = vpop.f32.mrf.mxu1 }
0x3051   :  { %v2063_v36 = vrot.slane %v2061_v34, 2  ;;  %v2054_v43 = vadd.f32 %v2052_v30, %v3196_v56 }
0x3053   :  { %2064 = vrot.lane.b32.xlu0 %v2063_v36, %s2732_s21  ;;  %v2296_v37 = vmul.f32 -1.442695, %v2054_v43 }
0x3055   :  { %2697 = vpow2.f32 %v2296_v37 }
0x3062   :  { %v2698_v38 = vpop.eup %2697 }
0x3063   :  { %v2058_v40 = vadd.f32 1.0, %v2698_v38 }
0x3065   :  { %2699 = vrcp.f32 %v2058_v40 }
0x3072   :  { %v2700_v41 = vpop.eup %2699 }
0x30c5   :  { %v2065_v42 = vpop.permute.xlu0 %2064 }
0x30c6   :  { %v2067_v44 = vmul.f32 %v2700_v41, %v2065_v42 }
0x30c8   :  { %2069 = vrot.lane.b32.xlu1 %v2067_v44, %s2732_s21 }
0x313a   :  { %v2070_v46 = vpop.permute.xlu1 %2069 }
0x313b   :  { %v2072_v39 = vadd.f32 %v2070_v46, %v3196_v56 }
0x313d   :  { %2701 = vtanh.f32 %v2072_v39 }
0x314a   :  { %v2702_v47 = vpop.eup %2701 }
0x314b   :  { %v2075_v54 = vrot.slane %v2702_v47, 2 }
0x314d   :  { %v2077_v48 = vsub.f32 %v1970_v29, %v2075_v54 }
0x314f   :  { %v2079_v50 = vrot.slane %v2077_v48, 6 }
0x3151   :  { %2080 = vrot.lane.b32.xlu0 %v2079_v50, %s2731_s20 }
0x3155   :  { %1389 = vrot.lane.b32.xlu0 %v3132_v26, %s2732_s21 }
0x3159   :  { %1625 = vrot.lane.b32.xlu0 %v3178_v20, %s2732_s21  ;;  %v2102_v20 = vld [vmem:[%s3300_s4 + $0x18] sm:$0xff] }
0x315a   :  { %2589 = vmatprep.subr.mxu0 %v2102_v20 }
0x315b   :  { %2590 = vmatpush3.msra.mxu0 %v2102_v20 }
0x315c   :  { %2591 = vmatprep.subr.mxu0 %v2101_v49 }
0x315d   :  { %1972 = vrot.lane.b32.xlu0 %v1970_v29, %s2732_s21  ;;  %2592 = vmatpush3.msra.mxu0 %v2101_v49 }
0x31c3   :  { %v2081_v17 = vpop.permute.xlu0 %2080 }
0x31c4   :  { %v2083_v23 = vmul.f32 %v2700_v41, %v2081_v17 }
0x31c6   :  { %2085 = vrot.lane.b32.xlu1 %v2083_v23, %s2733_s22 }
0x31c7   :  { %v1390_v56 = vpop.permute.xlu0 %1389 }
0x31c8   :  { %1392 = vst.msk [vmem:[#allocation2] sm:$0xc] %vm355_vm4, %v1390_v56 }
0x31ca   :  { %1507 = vrot.lane.b32.xlu1 %v3155_v53, %s2732_s21  ;;  %v2100_v53 = vld [vmem:[%s3300_s4 + $0x8] sm:$0xff] }
0x31cb   :  { %v1626_v51 = vpop.permute.xlu0 %1625  ;;  %2593 = vmatprep.subr.mxu0 %v2100_v53 }
0x31cc   :  { %1628 = vst.msk [vmem:[#allocation2] sm:$0xc0] %vm593_vm5, %v1626_v51  ;;  %2594 = vmatpush3.msra.mxu0 %v2100_v53 }
0x31cd   :  { %2595 = vmatprep.subr.mxu0 %v2099_v52 }
0x31ce   :  { %1854 = vrot.lane.b32.xlu1 %v3223_v0, %s2732_s21  ;;  %2596 = vmatpush3.msra.mxu0 %v2099_v52  ;;  %v2096_v0 = vld [vmem:[%s3301_s5] sm:$0x7]  ;;  %s2734_s5 = smov [#allocation3]  }
0x31cf   :  { %v1973_v26 = vpop.permute.xlu0 %1972  ;;  %v2106_v2 = vrot.slane %v2096_v0, %v2105_v63  ;;  %s2236_s26 = sshll.u32 %s2734_s5, 4  ;;  %s2237_s26 = int_to_ptr.vmem [resolvable:$true] %s2236_s26 }
0x31d0   :  { %1975 = vst.msk [vmem:[#allocation2 + $0x8] sm:$0x30] %vm474_vm6, %v1973_v26  ;;  %s2707_s27 = scalar_lea.vmem %s2237_s26, 64  ;;  %p2712_p1 = scmp.lt.s32.totalorder %s2237_s26, %s2237_s26 }
0x31d1   :  { %p2708_p0 = scmp.ne.s32.totalorder %s2237_s26, %s2707_s27  ;;  %p2713_p2 = scmp.lt.s32.totalorder %s2707_s27, %s2707_s27 }
0x31d3   :  { %p2714_p3 = por %p2713_p2, %p2712_p1 }
0x31d5   :  { %p2715_p4 = pnand %p2714_p3, %p2708_p0 }
0x3238   :  { %v2086_v3 = vpop.permute.xlu1 %2085 }
0x3239   :  { %v2088_v24 = vadd.f32 %v2702_v47, %v2086_v3 }
0x323b   :  { %2090 = vrot.lane.b32.xlu1 %v2088_v24, %s2732_s21 }
0x323c   :  { %v1508_v55 = vpop.permute.xlu1 %1507 }
0x323d   :  { %1510 = vst.msk [vmem:[#allocation2] sm:$0x30] %vm474_vm6, %v1508_v55 }
0x3240   :  { %v1855_v57 = vpop.permute.xlu1 %1854 }
0x3241   :  { %1857 = vst.msk [vmem:[#allocation2 + $0x8] sm:$0xc] %vm355_vm4, %v1855_v57 }
0x3244   :  { %v2097_v58 = vld [vmem:[#allocation2] sm:$0xff] }
0x3245   :  { %2597 = vmatprep.mubr.msk.f32.mxu0 %vm124_vm2, %v2097_v58 }
0x32ad   :  { %v2091_v59 = vpop.permute.xlu1 %2090 }
0x32ae   :  { %2093 = vst.msk [vmem:[#allocation2 + $0x8] sm:$0xc0] %vm593_vm5, %v2091_v59  ;;  %2095 = vst.msk [vmem:[#allocation3 - $0x4] sm:$0xc0] %vm593_vm5, %v2091_v59 }
0x32b5   :  { %v2098_v60 = vld [vmem:[#allocation2 + $0x8] sm:$0xff] }
0x32b6   :  { %2598 = vmatmul.mubr.msk.f32.vlgmr.msra.gmra.mxu0 %vm124_vm2, %v2098_v60 }
0x3376   :  { %v2599_v4 = vpop.f32.mrf.mxu0 }
0x3377   :  { %v2185_v8 = vadd.f32 %v2599_v4, %v2106_v2 }
0x3378   :  { %v2179_v15 = vpop.f32.mrf.mxu0 }
0x3379   :  { %v2180_v6 = vadd.f32 %v2179_v15, %v2106_v2  ;;  %v2191_v10 = vsel %vm124_vm2, %v2185_v8, 0.0 }
0x337a   :  { %2192 = vadd.xlane.f32.xlu1 %v2191_v10 }
0x337b   :  { %v2188_v12 = vsel %vm124_vm2, %v2180_v6, 0.0 }
0x337c   :  { %2189 = vadd.xlane.f32.xlu0 %v2188_v12 }
0x3403   :  { %v2193_v13 = vpop.xlane.xlu1 %2192 }
0x3404   :  { %v2196_v14 = vmul.f32 0.03125, %v2193_v13 }
0x3405   :  { %v2190_v16 = vpop.xlane.xlu0 %2189 }
0x3406   :  { %v2195_v1 = vmul.f32 0.03125, %v2190_v16  ;;  %v2198_v18 = vsub.f32 %v2185_v8, %v2196_v14 }
0x3408   :  { %v2197_v11 = vsub.f32 %v2180_v6, %v2195_v1  ;;  %v2200_v45 = vmul.f32 %v2198_v18, %v2198_v18 }
0x340a   :  { %v2199_v19 = vmul.f32 %v2197_v11, %v2197_v11  ;;  %v2204_v21 = vsel %vm124_vm2, %v2200_v45, 0.0 }
0x340c   :  { %v2201_v5 = vsel %vm124_vm2, %v2199_v19, 0.0 }
0x340d   :  { %2202 = vadd.xlane.f32.xlu0 %v2201_v5 }
0x3411   :  { %2205 = vadd.xlane.f32.xlu0 %v2204_v21 }
0x3412   :  { %2718 = shalt.err (!%p2715_p4)
}
0x3413   :  { %s2735_s28 = smov 2   ;;  %v2217_v29 = vsub.s32 1, %v2104_v62  ;;  %v2223_v31 = vsub.s32 2, %v2104_v62 }
0x3414   :  { %2242 = dma.vmem_to_hbm [thread:$0]  %s2237_s26, 64, %s3303_s7, [#allocation4], %s2733_s22, %s2733_s22, %s2735_s28  }
0x3415   :  { %v2218_v32 = vrot.slane %v2096_v0, %v2217_v29  ;;  %v2224_v34 = vrot.slane %v2096_v0, %v2223_v31 }
0x3496   :  { %v2203_v22 = vpop.xlane.xlu0 %2202 }
0x3497   :  { %v2207_v7 = vmul.f32 0.03125, %v2203_v22 }
0x3499   :  { %v2209_v9 = vadd.f32 1e-05, %v2207_v7 }
0x349a   :  { %v2206_v25 = vpop.xlane.xlu0 %2205 }
0x349b   :  { %2703 = vrsqrt.f32 %v2209_v9  ;;  %v2208_v27 = vmul.f32 0.03125, %v2206_v25 }
0x349d   :  { %v2210_v28 = vadd.f32 1e-05, %v2208_v27 }
0x349f   :  { %2705 = vrsqrt.f32 %v2210_v28 }
0x34a8   :  { %v2704_v33 = vpop.eup %2703 }
0x34a9   :  { %v2213_v35 = vmul.f32 %v2704_v33, %v2197_v11 }
0x34ab   :  { %v2219_v36 = vmul.f32 %v2218_v32, %v2213_v35 }
0x34ac   :  { %v2706_v30 = vpop.eup %2705 }
0x34ad   :  { %v2225_v43 = vadd.f32 %v2224_v34, %v2219_v36  ;;  %v2214_v37 = vmul.f32 %v2706_v30, %v2198_v18 }
0x34af   :  { %2227 = vst.msk [vmem:[%s3302_s6] sm:$0xff] %vm124_vm2, %v2225_v43  ;;  %v2220_v38 = vmul.f32 %v2218_v32, %v2214_v37 }
0x34b1   :  { %v2226_v40 = vadd.f32 %v2224_v34, %v2220_v38 }
0x34b3   :  { %2228 = vst.msk [vmem:[%s3302_s6 + $0x8] sm:$0xff] %vm124_vm2, %v2226_v40 }
0x34b4   :  { %2727 = dma.done.wait [#allocation4], 64  }
0x34b5   :  { %2728 = vsyncadd [#allocation4], 4294967232 }
0x34b6   :  { %2248 = vsyncpa [#allocation4], 1 }

</bundles_post_ra>
